<compile_context>
chip_gen: v7x
topology: tpu7x:2x2x1
jax: 0.10.0
libtpu: 0.0.40
codegen_flags: <defaults>
</compile_context>

<pallas_src>
import math

import jax
import jax.numpy as jnp
from jax.experimental import pallas as pl
from jax.experimental.pallas import tpu as pltpu

LN_EPS = 1e-5
_INV_SQRT2 = 1.0 / math.sqrt(2.0)


# --------------------------------------------------------------------------- #
# helpers
# --------------------------------------------------------------------------- #
def _round_up(n, m):
    return (n + m - 1) // m * m


def _vmem_limit_bytes(est_bytes):
    """Request ~1.5x the static estimate, clamped to ~90% of physical VMEM."""
    try:
        cap = int(pltpu.get_tpu_info().vmem_capacity_bytes)
    except Exception:  # emulator / older JAX: assume the smallest (v7x) VMEM
        cap = 64 << 20
    return int(min(max(int(1.5 * est_bytes), 32 << 20), int(0.9 * cap)))


def _pick_batch_tile(B):
    """Largest batch tile <= 256 that divides B, preferring >= 2 grid steps so
    the 'parallel' batch axis can shard across v7x's two TensorCores."""
    divisors = [c for c in (256, 128, 64, 32, 16, 8) if B % c == 0]
    if not divisors:
        return B                      # full batch as one block (still legal)
    for c in divisors:
        if B // c >= 2:
            return c
    return divisors[0]


def _resident_spec(shape, pipeline_mode):
    """BlockSpec for a parameter pinned to block (0, ..., 0) for the whole grid."""
    index_map = lambda *_: (0,) * len(shape)
    if pipeline_mode is None:
        return pl.BlockSpec(shape, index_map)
    return pl.BlockSpec(shape, index_map, pipeline_mode=pipeline_mode)


_SINGLE_BUFFER_WEIGHTS_OK = True


def _call_with_weight_mode(fn, *args, **kwargs):
    """Try single-buffered resident weights (pl.Buffered(1)); fall back to the
    default double-buffered pipeline if this JAX build rejects it."""
    global _SINGLE_BUFFER_WEIGHTS_OK
    if _SINGLE_BUFFER_WEIGHTS_OK and hasattr(pl, "Buffered"):
        try:
            return fn(*args, weight_pipeline_mode=pl.Buffered(1), **kwargs)
        except Exception:
            _SINGLE_BUFFER_WEIGHTS_OK = False
    return fn(*args, weight_pipeline_mode=None, **kwargs)


# --------------------------------------------------------------------------- #
# shared in-kernel math: fused one-pass LayerNorm + gates + state update
# --------------------------------------------------------------------------- #
def _cell_update(z, c_prev_f32, gamma, beta, inv_count):
    """z: (TB, 4*Hp) f32 pre-activations; returns (out, c_new) in f32."""
    s1 = jnp.sum(z, axis=-1, keepdims=True)
    s2 = jnp.sum(z * z, axis=-1, keepdims=True)
    mu = s1 * inv_count
    var = s2 * inv_count - mu * mu
    rstd = jax.lax.rsqrt(var + LN_EPS)
    scale = gamma * rstd                              # gamma folded into rstd
    zn = z * scale + (beta - mu * scale)

    Hp = c_prev_f32.shape[-1]                         # lane-aligned (mult of 128)
    f_gate = jax.nn.sigmoid(zn[:, 0 * Hp:1 * Hp])
    i_gate = jax.nn.sigmoid(zn[:, 1 * Hp:2 * Hp])
    o_gate = jax.nn.sigmoid(zn[:, 2 * Hp:3 * Hp])
    g = zn[:, 3 * Hp:4 * Hp]
    # exact (erf-based) GELU, matching torch.nn.GELU() default
    g = 0.5 * g * (1.0 + jax.lax.erf(g * _INV_SQRT2))

    c_new = f_gate * c_prev_f32 + i_gate * g
    out = o_gate * c_new
    return out, c_new


def _make_step_kernel(inv_count):
    def kernel(x_ref, h_ref, c_ref, wx_ref, wh_ref, gamma_ref, beta_ref,
               out_ref, cell_ref):
        z = jnp.dot(x_ref[...], wx_ref[...], preferred_element_type=jnp.float32)
        z = z + jnp.dot(h_ref[...], wh_ref[...], preferred_element_type=jnp.float32)
        out, c_new = _cell_update(z, c_ref[...].astype(jnp.float32),
                                  gamma_ref[...], beta_ref[...], inv_count)
        out_ref[...] = out.astype(out_ref.dtype)
        cell_ref[...] = c_new.astype(cell_ref.dtype)
    return kernel


def _make_seq_kernel(inv_count):
    def kernel(x_ref, h0_ref, c0_ref, wx_ref, wh_ref, gamma_ref, beta_ref,
               out_ref, cfin_ref, h_sc, c_sc):
        t = pl.program_id(1)

        @pl.when(t == 0)
        def _():
            h_sc[...] = h0_ref[...]
            c_sc[...] = c0_ref[...].astype(jnp.float32)

        z = jnp.dot(x_ref[0], wx_ref[...], preferred_element_type=jnp.float32)
        z = z + jnp.dot(h_sc[...], wh_ref[...], preferred_element_type=jnp.float32)
        out, c_new = _cell_update(z, c_sc[...], gamma_ref[...], beta_ref[...],
                                  inv_count)
        h_sc[...] = out.astype(h_sc.dtype)
        c_sc[...] = c_new
        out_ref[0] = out.astype(out_ref.dtype)

        @pl.when(t == pl.num_programs(1) - 1)
        def _():
            cfin_ref[...] = c_new.astype(cfin_ref.dtype)
    return kernel


# --------------------------------------------------------------------------- #
# one-time parameter layout plumbing (call ONCE at load, not per step)
# --------------------------------------------------------------------------- #
def prepare_params(w_fused, gamma, beta, i_size, h_size, *,
                   weight_dtype=jnp.bfloat16):
    """Split/transpose/pad the fused nn.Linear weight and LN params.

    w_fused: (4H, I+H)  [PyTorch nn.Linear layout, bias=False]
    gamma, beta: (4, H) [nn.LayerNorm((4, H))]
    Returns wx (Ip, 4*Hp), wh (Hp, 4*Hp), gamma/beta (1, 4*Hp), Ip, Hp.
    """
    I, H = i_size, h_size
    Ip = _round_up(I, 128)
    Hp = _round_up(H, 128)

    w_t = jnp.transpose(w_fused)                      # (I+H, 4H), z = xh @ w_t
    wx = w_t[:I].reshape(I, 4, H)
    wh = w_t[I:].reshape(H, 4, H)
    wx = jnp.pad(wx, ((0, Ip - I), (0, 0), (0, Hp - H))).reshape(Ip, 4 * Hp)
    wh = jnp.pad(wh, ((0, Hp - H), (0, 0), (0, Hp - H))).reshape(Hp, 4 * Hp)
    if weight_dtype is not None:
        wx = wx.astype(weight_dtype)
        wh = wh.astype(weight_dtype)

    gamma_p = jnp.pad(gamma, ((0, 0), (0, Hp - H))).reshape(1, 4 * Hp)
    beta_p = jnp.pad(beta, ((0, 0), (0, Hp - H))).reshape(1, 4 * Hp)
    gamma_p = gamma_p.astype(jnp.float32)
    beta_p = beta_p.astype(jnp.float32)
    return wx, wh, gamma_p, beta_p, Ip, Hp


# --------------------------------------------------------------------------- #
# single-step pallas_call
# --------------------------------------------------------------------------- #
def _step_call(x_p, h_p, c_p, wx_p, wh_p, gamma_p, beta_p, *, h_true,
               weight_pipeline_mode):
    B, Ip = x_p.shape
    Hp = h_p.shape[-1]
    assert wx_p.shape == (Ip, 4 * Hp) and wh_p.shape == (Hp, 4 * Hp)

    TB = _pick_batch_tile(B)
    grid = (B // TB,)
    kernel = _make_step_kernel(1.0 / (4.0 * h_true))

    w_sz = jnp.dtype(wx_p.dtype).itemsize
    a_sz = jnp.dtype(x_p.dtype).itemsize
    c_sz = jnp.dtype(c_p.dtype).itemsize
    wbuf = 1 if weight_pipeline_mode is not None else 2
    est = (wbuf * (Ip + Hp) * 4 * Hp * w_sz           # resident weights
           + 2 * TB * (Ip + Hp) * a_sz                # x/h tiles (double-buffered)
           + 2 * TB * Hp * c_sz                       # c tile
           + 4 * TB * Hp * c_sz                       # out / cell tiles
           + 4 * 4 * Hp * 4                           # gamma / beta
           + 6 * TB * 4 * Hp * 4)                     # f32 temporaries

    resident = lambda shape: _resident_spec(shape, weight_pipeline_mode)

    return pl.pallas_call(
        kernel,
        out_shape=(jax.ShapeDtypeStruct((B, Hp), c_p.dtype),
                   jax.ShapeDtypeStruct((B, Hp), c_p.dtype)),
        grid_spec=pltpu.PrefetchScalarGridSpec(
            num_scalar_prefetch=0,
            grid=grid,
            in_specs=[
                pl.BlockSpec((TB, Ip), lambda b: (b, 0)),   # x tile
                pl.BlockSpec((TB, Hp), lambda b: (b, 0)),   # h tile
                pl.BlockSpec((TB, Hp), lambda b: (b, 0)),   # c tile
                resident((Ip, 4 * Hp)),                     # Wx (resident)
                resident((Hp, 4 * Hp)),                     # Wh (resident)
                resident((1, 4 * Hp)),                      # gamma
                resident((1, 4 * Hp)),                      # beta
            ],
            out_specs=(pl.BlockSpec((TB, Hp), lambda b: (b, 0)),
                       pl.BlockSpec((TB, Hp), lambda b: (b, 0))),
        ),
        compiler_params=pltpu.CompilerParams(
            dimension_semantics=("parallel",),
            vmem_limit_bytes=_vmem_limit_bytes(est),
        ),
        # c buffer donated to the cell output (recurrent reuse); do not reuse
        # the original c_p array after this call.
        input_output_aliases={2: 1},
    )(x_p, h_p, c_p, wx_p, wh_p, gamma_p, beta_p)


def lstm_cell_pallas(x, h, c, w_fused, gamma, beta, *, weight_dtype=jnp.bfloat16):
    """One LSTM cell step matching the PyTorch module forward (eval mode).

    x: (B, I); h, c: (B, H); w_fused: (4H, I+H); gamma/beta: (4, H).
    In a real recurrent loop call prepare_params() once and keep h/c in the
    padded layout; better yet, use lstm_sequence_pallas for whole sequences.
    """
    B, I = x.shape
    H = h.shape[-1]
    assert w_fused.shape == (4 * H, I + H)

    wx_p, wh_p, gamma_p, beta_p, Ip, Hp = prepare_params(
        w_fused, gamma, beta, I, H, weight_dtype=weight_dtype)
    cd = wx_p.dtype
    x_p = jnp.pad(x, ((0, 0), (0, Ip - I))).astype(cd)
    h_p = jnp.pad(h, ((0, 0), (0, Hp - H))).astype(cd)
    c_p = jnp.pad(c, ((0, 0), (0, Hp - H)))

    out_p, cell_p = _call_with_weight_mode(
        _step_call, x_p, h_p, c_p, wx_p, wh_p, gamma_p, beta_p, h_true=H)
    return out_p[:, :H], cell_p[:, :H]


# --------------------------------------------------------------------------- #
# fused-sequence pallas_call: T steps, weights DMA'd once, h/c in VMEM scratch
# --------------------------------------------------------------------------- #
def _seq_call(xs_p, h0_p, c0_p, wx_p, wh_p, gamma_p, beta_p, *, h_true,
              weight_pipeline_mode):
    T, B, Ip = xs_p.shape
    Hp = h0_p.shape[-1]
    assert wx_p.shape == (Ip, 4 * Hp) and wh_p.shape == (Hp, 4 * Hp)

    TB = _pick_batch_tile(B)
    grid = (B // TB, T)                               # time axis last (carried)
    kernel = _make_seq_kernel(1.0 / (4.0 * h_true))

    w_sz = jnp.dtype(wx_p.dtype).itemsize
    a_sz = jnp.dtype(xs_p.dtype).itemsize
    c_sz = jnp.dtype(c0_p.dtype).itemsize
    wbuf = 1 if weight_pipeline_mode is not None else 2
    est = (wbuf * (Ip + Hp) * 4 * Hp * w_sz
           + 2 * TB * Ip * a_sz                       # x block (double-buffered)
           + 2 * TB * Hp * (a_sz + c_sz)              # h0 / c0 blocks
           + 2 * TB * Hp * c_sz + 2 * TB * Hp * c_sz  # out / c_final blocks
           + TB * Hp * (a_sz + 4)                     # h / c VMEM scratch
           + 4 * 4 * Hp * 4
           + 6 * TB * 4 * Hp * 4)

    resident = lambda shape: _resident_spec(shape, weight_pipeline_mode)

    return pl.pallas_call(
        kernel,
        out_shape=(jax.ShapeDtypeStruct((T, B, Hp), c0_p.dtype),
                   jax.ShapeDtypeStruct((B, Hp), c0_p.dtype)),
        grid_spec=pltpu.PrefetchScalarGridSpec(
            num_scalar_prefetch=0,
            grid=grid,
            in_specs=[
                pl.BlockSpec((1, TB, Ip), lambda b, t: (t, b, 0)),  # x_t tile
                pl.BlockSpec((TB, Hp), lambda b, t: (b, 0)),        # h0 tile
                pl.BlockSpec((TB, Hp), lambda b, t: (b, 0)),        # c0 tile
                resident((Ip, 4 * Hp)),                             # Wx
                resident((Hp, 4 * Hp)),                             # Wh
                resident((1, 4 * Hp)),                              # gamma
                resident((1, 4 * Hp)),                              # beta
            ],
            out_specs=(pl.BlockSpec((1, TB, Hp), lambda b, t: (t, b, 0)),
                       pl.BlockSpec((TB, Hp), lambda b, t: (b, 0))),
            scratch_shapes=[pltpu.VMEM((TB, Hp), h0_p.dtype),       # h carry
                            pltpu.VMEM((TB, Hp), jnp.float32)],     # c carry (f32)
        ),
        compiler_params=pltpu.CompilerParams(
            dimension_semantics=("parallel", "arbitrary"),
            vmem_limit_bytes=_vmem_limit_bytes(est),
        ),
    )(xs_p, h0_p, c0_p, wx_p, wh_p, gamma_p, beta_p)


def lstm_sequence_pallas(xs, h0, c0, w_fused, gamma, beta, *,
                         weight_dtype=jnp.bfloat16):
    """Run the LSTM cell over a whole sequence in one pallas_call.

    xs: (T, B, I); h0, c0: (B, H). Returns (outputs (T, B, H), final cell (B, H)).
    """
    T, B, I = xs.shape
    H = h0.shape[-1]
    assert w_fused.shape == (4 * H, I + H)

    wx_p, wh_p, gamma_p, beta_p, Ip, Hp = prepare_params(
        w_fused, gamma, beta, I, H, weight_dtype=weight_dtype)
    cd = wx_p.dtype
    xs_p = jnp.pad(xs, ((0, 0), (0, 0), (0, Ip - I))).astype(cd)
    h0_p = jnp.pad(h0, ((0, 0), (0, Hp - H))).astype(cd)
    c0_p = jnp.pad(c0, ((0, 0), (0, Hp - H)))

    outs_p, cT_p = _call_with_weight_mode(
        _seq_call, xs_p, h0_p, c0_p, wx_p, wh_p, gamma_p, beta_p, h_true=H)
    return outs_p[:, :, :H], cT_p[:, :H]


# --------------------------------------------------------------------------- #
# pure-JAX references (mirror the PyTorch forward, eval mode)
# --------------------------------------------------------------------------- #
def lstm_cell_reference(x, h, c, w_fused, gamma, beta):
    B = x.shape[0]
    H = h.shape[-1]
    z = jnp.concatenate([x, h], axis=-1) @ w_fused.T
    z = z.reshape(B, 4, H)
    mu = jnp.mean(z, axis=(-2, -1), keepdims=True)
    var = jnp.mean((z - mu) ** 2, axis=(-2, -1), keepdims=True)
    zn = (z - mu) / jnp.sqrt(var + LN_EPS) * gamma + beta
    f_gate = jax.nn.sigmoid(zn[:, 0, :])
    i_gate = jax.nn.sigmoid(zn[:, 1, :])
    o_gate = jax.nn.sigmoid(zn[:, 2, :])
    g = jax.nn.gelu(zn[:, 3, :], approximate=False)
    c_new = f_gate * c + i_gate * g
    return o_gate * c_new, c_new


def lstm_sequence_reference(xs, h0, c0, w_fused, gamma, beta):
    def step(carry, x):
        h, c = carry
        out, c_new = lstm_cell_reference(x, h, c, w_fused, gamma, beta)
        return (out, c_new), out
    (_, cT), outs = jax.lax.scan(step, (h0, c0), xs)
    return outs, cT


# --------------------------------------------------------------------------- #
if __name__ == "__main__":
    B, I, H, T = 8, 32, 32, 8

    key = jax.random.PRNGKey(0)
    kx, kh, kc, kw, ks = jax.random.split(key, 5)

    x = jax.random.normal(kx, (B, I), dtype=jnp.float32)
    h = jax.random.normal(kh, (B, H), dtype=jnp.float32)
    c = jax.random.normal(kc, (B, H), dtype=jnp.float32)
    xs = jax.random.normal(ks, (T, B, I), dtype=jnp.float32)

    # nn.Linear(I+H, 4H, bias=False) default init: U(-k, k), k = 1/sqrt(I+H)
    k_lin = 1.0 / math.sqrt(I + H)
    w_fused = jax.random.uniform(kw, (4 * H, I + H), jnp.float32, -k_lin, k_lin)
    # nn.LayerNorm((4, H)) default init
    gamma = jnp.ones((4, H), dtype=jnp.float32)
    beta = jnp.zeros((4, H), dtype=jnp.float32)

    # ------ single step ------
    ref_out, ref_cell = lstm_cell_reference(x, h, c, w_fused, gamma, beta)

    out32, cell32 = lstm_cell_pallas(x, h, c, w_fused, gamma, beta,
                                     weight_dtype=jnp.float32)
    jax.block_until_ready((out32, cell32))
    assert jnp.allclose(out32, ref_out, rtol=1e-4, atol=1e-4), "step f32 out"
    assert jnp.allclose(cell32, ref_cell, rtol=1e-4, atol=1e-4), "step f32 cell"

    out16, cell16 = lstm_cell_pallas(x, h, c, w_fused, gamma, beta)  # bf16 default
    jax.block_until_ready((out16, cell16))
    assert jnp.allclose(out16, ref_out, rtol=5e-2, atol=5e-2), "step bf16 out"
    assert jnp.allclose(cell16, ref_cell, rtol=5e-2, atol=5e-2), "step bf16 cell"

    # ------ fused sequence (weights resident across all T steps) ------
    ref_outs, ref_cT = lstm_sequence_reference(xs, h, c, w_fused, gamma, beta)

    outs32, cT32 = lstm_sequence_pallas(xs, h, c, w_fused, gamma, beta,
                                        weight_dtype=jnp.float32)
    jax.block_until_ready((outs32, cT32))
    assert jnp.allclose(outs32, ref_outs, rtol=1e-3, atol=1e-3), "seq f32 outs"
    assert jnp.allclose(cT32, ref_cT, rtol=1e-3, atol=1e-3), "seq f32 cell"

    outs16, cT16 = lstm_sequence_pallas(xs, h, c, w_fused, gamma, beta)
    jax.block_until_ready((outs16, cT16))
    assert jnp.allclose(outs16, ref_outs, rtol=1e-1, atol=1e-1), "seq bf16 outs"
    assert jnp.allclose(cT16, ref_cT, rtol=1e-1, atol=1e-1), "seq bf16 cell"

    print("KERNEL_OK")
</pallas_src>

<mosaic_0001>
module attributes {stable_mosaic.version = 11 : i64} {
  func.func @kernel(%arg0: i32, %arg1: memref<8x128xf32, #tpu.memory_space<vmem>>, %arg2: memref<8x128xf32, #tpu.memory_space<vmem>>, %arg3: memref<8x128xf32, #tpu.memory_space<vmem>>, %arg4: memref<128x512xf32, #tpu.memory_space<vmem>>, %arg5: memref<128x512xf32, #tpu.memory_space<vmem>>, %arg6: memref<1x512xf32, #tpu.memory_space<vmem>>, %arg7: memref<1x512xf32, #tpu.memory_space<vmem>>, %arg8: memref<8x128xf32, #tpu.memory_space<vmem>>, %arg9: memref<8x128xf32, #tpu.memory_space<vmem>>) attributes {dimension_semantics = [#tpu.dimension_semantics<parallel>], iteration_bounds = array<i64: 1>, scalar_prefetch = 0 : i64, scratch_operands = 0 : i64, tpu.core_type = #tpu.core_type<tc>, window_params = [{transform_indices = @transform_0, window_bounds = array<i64: 8, 128>}, {transform_indices = @transform_1, window_bounds = array<i64: 8, 128>}, {transform_indices = @transform_2, window_bounds = array<i64: 8, 128>}, {pipeline_mode = #tpu.pipeline_mode<synchronous>, transform_indices = @transform_3, window_bounds = array<i64: 128, 512>}, {pipeline_mode = #tpu.pipeline_mode<synchronous>, transform_indices = @transform_4, window_bounds = array<i64: 128, 512>}, {pipeline_mode = #tpu.pipeline_mode<synchronous>, transform_indices = @transform_5, window_bounds = array<i64: 1, 512>}, {pipeline_mode = #tpu.pipeline_mode<synchronous>, transform_indices = @transform_6, window_bounds = array<i64: 1, 512>}, {transform_indices = @transform_7, window_bounds = array<i64: 8, 128>}, {transform_indices = @transform_8, window_bounds = array<i64: 8, 128>}]} {
    %c0 = arith.constant 0 : index
    %c0_0 = arith.constant 0 : index
    %0 = vector.load %arg1[%c0, %c0_0] : memref<8x128xf32, #tpu.memory_space<vmem>>, vector<8x128xf32>
    %c0_1 = arith.constant 0 : index
    %c0_2 = arith.constant 0 : index
    %1 = vector.load %arg4[%c0_1, %c0_2] : memref<128x512xf32, #tpu.memory_space<vmem>>, vector<128x512xf32>
    %cst = arith.constant dense<0.000000e+00> : vector<8x512xf32>
    %2 = tpu.matmul %0, %1, %cst {dimension_numbers = #tpu.dot_dimension_numbers<[1], [0], [0], [1], [0, 0, 1, 1], [], []>} : vector<8x128xf32>, vector<128x512xf32>, vector<8x512xf32> -> vector<8x512xf32>
    %c0_3 = arith.constant 0 : index
    %c0_4 = arith.constant 0 : index
    %3 = vector.load %arg2[%c0_3, %c0_4] : memref<8x128xf32, #tpu.memory_space<vmem>>, vector<8x128xf32>
    %c0_5 = arith.constant 0 : index
    %c0_6 = arith.constant 0 : index
    %4 = vector.load %arg5[%c0_5, %c0_6] : memref<128x512xf32, #tpu.memory_space<vmem>>, vector<128x512xf32>
    %cst_7 = arith.constant dense<0.000000e+00> : vector<8x512xf32>
    %5 = tpu.matmul %3, %4, %cst_7 {dimension_numbers = #tpu.dot_dimension_numbers<[1], [0], [0], [1], [0, 0, 1, 1], [], []>} : vector<8x128xf32>, vector<128x512xf32>, vector<8x512xf32> -> vector<8x512xf32>
    %6 = arith.addf %2, %5 : vector<8x512xf32>
    %c0_8 = arith.constant 0 : index
    %c0_9 = arith.constant 0 : index
    %7 = vector.load %arg3[%c0_8, %c0_9] : memref<8x128xf32, #tpu.memory_space<vmem>>, vector<8x128xf32>
    %c0_10 = arith.constant 0 : index
    %c0_11 = arith.constant 0 : index
    %8 = vector.load %arg6[%c0_10, %c0_11] : memref<1x512xf32, #tpu.memory_space<vmem>>, vector<1x512xf32>
    %c0_12 = arith.constant 0 : index
    %c0_13 = arith.constant 0 : index
    %9 = vector.load %arg7[%c0_12, %c0_13] : memref<1x512xf32, #tpu.memory_space<vmem>>, vector<1x512xf32>
    %cst_14 = arith.constant dense<0.000000e+00> : vector<8xf32>
    %10 = vector.multi_reduction <add>, %6, %cst_14 [1] : vector<8x512xf32> to vector<8xf32>
    %11 = vector.shape_cast %10 : vector<8xf32> to vector<8x1xf32>
    %12 = arith.mulf %6, %6 : vector<8x512xf32>
    %cst_15 = arith.constant dense<0.000000e+00> : vector<8xf32>
    %13 = vector.multi_reduction <add>, %12, %cst_15 [1] : vector<8x512xf32> to vector<8xf32>
    %14 = vector.shape_cast %13 : vector<8xf32> to vector<8x1xf32>
    %cst_16 = arith.constant 7.812500e-03 : f32
    %15 = vector.broadcast %cst_16 : f32 to vector<8x1xf32>
    %16 = arith.mulf %11, %15 : vector<8x1xf32>
    %cst_17 = arith.constant 7.812500e-03 : f32
    %17 = vector.broadcast %cst_17 : f32 to vector<8x1xf32>
    %18 = arith.mulf %14, %17 : vector<8x1xf32>
    %19 = arith.mulf %16, %16 : vector<8x1xf32>
    %20 = arith.subf %18, %19 : vector<8x1xf32>
    %cst_18 = arith.constant 9.99999974E-6 : f32
    %21 = vector.broadcast %cst_18 : f32 to vector<8x1xf32>
    %22 = arith.addf %20, %21 : vector<8x1xf32>
    %23 = math.rsqrt %22 : vector<8x1xf32>
    %24 = vector.broadcast %8 : vector<1x512xf32> to vector<8x512xf32>
    %25 = vector.broadcast %23 : vector<8x1xf32> to vector<8x512xf32>
    %26 = arith.mulf %24, %25 : vector<8x512xf32>
    %27 = arith.mulf %6, %26 : vector<8x512xf32>
    %28 = vector.broadcast %16 : vector<8x1xf32> to vector<8x512xf32>
    %29 = arith.mulf %28, %26 : vector<8x512xf32>
    %30 = vector.broadcast %9 : vector<1x512xf32> to vector<8x512xf32>
    %31 = arith.subf %30, %29 : vector<8x512xf32>
    %32 = arith.addf %27, %31 : vector<8x512xf32>
    %33 = vector.extract_strided_slice %32 {offsets = [0, 0], sizes = [8, 128], strides = [1, 1]} : vector<8x512xf32> to vector<8x128xf32>
    %34 = arith.negf %33 : vector<8x128xf32>
    %35 = math.exp %34 : vector<8x128xf32>
    %cst_19 = arith.constant 1.000000e+00 : f32
    %36 = vector.broadcast %cst_19 : f32 to vector<8x128xf32>
    %37 = arith.addf %36, %35 : vector<8x128xf32>
    %38 = arith.divf %36, %37 : vector<8x128xf32>
    %39 = vector.extract_strided_slice %32 {offsets = [0, 128], sizes = [8, 128], strides = [1, 1]} : vector<8x512xf32> to vector<8x128xf32>
    %40 = arith.negf %39 : vector<8x128xf32>
    %41 = math.exp %40 : vector<8x128xf32>
    %cst_20 = arith.constant 1.000000e+00 : f32
    %42 = vector.broadcast %cst_20 : f32 to vector<8x128xf32>
    %43 = arith.addf %42, %41 : vector<8x128xf32>
    %44 = arith.divf %42, %43 : vector<8x128xf32>
    %45 = vector.extract_strided_slice %32 {offsets = [0, 256], sizes = [8, 128], strides = [1, 1]} : vector<8x512xf32> to vector<8x128xf32>
    %46 = arith.negf %45 : vector<8x128xf32>
    %47 = math.exp %46 : vector<8x128xf32>
    %cst_21 = arith.constant 1.000000e+00 : f32
    %48 = vector.broadcast %cst_21 : f32 to vector<8x128xf32>
    %49 = arith.addf %48, %47 : vector<8x128xf32>
    %50 = arith.divf %48, %49 : vector<8x128xf32>
    %51 = vector.extract_strided_slice %32 {offsets = [0, 384], sizes = [8, 128], strides = [1, 1]} : vector<8x512xf32> to vector<8x128xf32>
    %cst_22 = arith.constant 5.000000e-01 : f32
    %52 = vector.broadcast %cst_22 : f32 to vector<8x128xf32>
    %53 = arith.mulf %52, %51 : vector<8x128xf32>
    %cst_23 = arith.constant 0.707106769 : f32
    %54 = vector.broadcast %cst_23 : f32 to vector<8x128xf32>
    %55 = arith.mulf %51, %54 : vector<8x128xf32>
    %56 = math.erf %55 : vector<8x128xf32>
    %cst_24 = arith.constant 1.000000e+00 : f32
    %57 = vector.broadcast %cst_24 : f32 to vector<8x128xf32>
    %58 = arith.addf %57, %56 : vector<8x128xf32>
    %59 = arith.mulf %53, %58 : vector<8x128xf32>
    %60 = arith.mulf %38, %7 : vector<8x128xf32>
    %61 = arith.mulf %44, %59 : vector<8x128xf32>
    %62 = arith.addf %60, %61 : vector<8x128xf32>
    %63 = arith.mulf %50, %62 : vector<8x128xf32>
    %c0_25 = arith.constant 0 : index
    %c0_26 = arith.constant 0 : index
    %64 = vector.load %arg8[%c0_25, %c0_26] : memref<8x128xf32, #tpu.memory_space<vmem>>, vector<8x128xf32>
    tpu.vector_store %arg8[%c0_25, %c0_26], %63 {strides = array<i32>} : memref<8x128xf32, #tpu.memory_space<vmem>>, vector<8x128xf32>,
    %c0_27 = arith.constant 0 : index
    %c0_28 = arith.constant 0 : index
    %65 = vector.load %arg9[%c0_27, %c0_28] : memref<8x128xf32, #tpu.memory_space<vmem>>, vector<8x128xf32>
    tpu.vector_store %arg9[%c0_27, %c0_28], %62 {strides = array<i32>} : memref<8x128xf32, #tpu.memory_space<vmem>>, vector<8x128xf32>,
    return
  }
  func.func @transform_0(%arg0: i32) -> (i32, i32) {
    %c0_i32 = arith.constant 0 : i32
    %c0_i32_0 = arith.constant 0 : i32
    return %arg0, %c0_i32 : i32, i32
  }
  func.func @transform_1(%arg0: i32) -> (i32, i32) {
    %c0_i32 = arith.constant 0 : i32
    %c0_i32_0 = arith.constant 0 : i32
    return %arg0, %c0_i32 : i32, i32
  }
  func.func @transform_2(%arg0: i32) -> (i32, i32) {
    %c0_i32 = arith.constant 0 : i32
    %c0_i32_0 = arith.constant 0 : i32
    return %arg0, %c0_i32 : i32, i32
  }
  func.func @transform_3(%arg0: i32) -> (i32, i32) {
    %c0_i32 = arith.constant 0 : i32
    %c0_i32_0 = arith.constant 0 : i32
    %c0_i32_1 = arith.constant 0 : i32
    return %c0_i32, %c0_i32_0 : i32, i32
  }
  func.func @transform_4(%arg0: i32) -> (i32, i32) {
    %c0_i32 = arith.constant 0 : i32
    %c0_i32_0 = arith.constant 0 : i32
    %c0_i32_1 = arith.constant 0 : i32
    return %c0_i32, %c0_i32_0 : i32, i32
  }
  func.func @transform_5(%arg0: i32) -> (i32, i32) {
    %c0_i32 = arith.constant 0 : i32
    %c0_i32_0 = arith.constant 0 : i32
    %c0_i32_1 = arith.constant 0 : i32
    return %c0_i32, %c0_i32_0 : i32, i32
  }
  func.func @transform_6(%arg0: i32) -> (i32, i32) {
    %c0_i32 = arith.constant 0 : i32
    %c0_i32_0 = arith.constant 0 : i32
    %c0_i32_1 = arith.constant 0 : i32
    return %c0_i32, %c0_i32_0 : i32, i32
  }
  func.func @transform_7(%arg0: i32) -> (i32, i32) {
    %c0_i32 = arith.constant 0 : i32
    %c0_i32_0 = arith.constant 0 : i32
    return %arg0, %c0_i32 : i32, i32
  }
  func.func @transform_8(%arg0: i32) -> (i32, i32) {
    %c0_i32 = arith.constant 0 : i32
    %c0_i32_0 = arith.constant 0 : i32
    return %arg0, %c0_i32 : i32, i32
  }
}

module attributes {stable_mosaic.version = 11 : i64} {
  func.func @kernel(%arg0: i32, %arg1: memref<8x128xf32, #tpu.memory_space<vmem>>, %arg2: memref<8x128xf32, #tpu.memory_space<vmem>>, %arg3: memref<8x128xf32, #tpu.memory_space<vmem>>, %arg4: memref<128x512xf32, #tpu.memory_space<vmem>>, %arg5: memref<128x512xf32, #tpu.memory_space<vmem>>, %arg6: memref<1x512xf32, #tpu.memory_space<vmem>>, %arg7: memref<1x512xf32, #tpu.memory_space<vmem>>, %arg8: memref<8x128xf32, #tpu.memory_space<vmem>>, %arg9: memref<8x128xf32, #tpu.memory_space<vmem>>) attributes {dimension_semantics = [#tpu.dimension_semantics<parallel>], iteration_bounds = array<i64: 1>, scalar_prefetch = 0 : i64, scratch_operands = 0 : i64, tpu.core_type = #tpu.core_type<tc>, window_params = [{transform_indices = @transform_0, window_bounds = array<i64: 8, 128>}, {transform_indices = @transform_1, window_bounds = array<i64: 8, 128>}, {transform_indices = @transform_2, window_bounds = array<i64: 8, 128>}, {pipeline_mode = #tpu.pipeline_mode<synchronous>, transform_indices = @transform_3, window_bounds = array<i64: 128, 512>}, {pipeline_mode = #tpu.pipeline_mode<synchronous>, transform_indices = @transform_4, window_bounds = array<i64: 128, 512>}, {pipeline_mode = #tpu.pipeline_mode<synchronous>, transform_indices = @transform_5, window_bounds = array<i64: 1, 512>}, {pipeline_mode = #tpu.pipeline_mode<synchronous>, transform_indices = @transform_6, window_bounds = array<i64: 1, 512>}, {transform_indices = @transform_7, window_bounds = array<i64: 8, 128>}, {transform_indices = @transform_8, window_bounds = array<i64: 8, 128>}]} {
    %c0 = arith.constant 0 : index
    %c0_0 = arith.constant 0 : index
    %0 = vector.load %arg1[%c0, %c0_0] : memref<8x128xf32, #tpu.memory_space<vmem>>, vector<8x128xf32>
    %c0_1 = arith.constant 0 : index
    %c0_2 = arith.constant 0 : index
    %1 = vector.load %arg4[%c0_1, %c0_2] : memref<128x512xf32, #tpu.memory_space<vmem>>, vector<128x512xf32>
    %cst = arith.constant dense<0.000000e+00> : vector<8x512xf32>
    %2 = tpu.matmul %0, %1, %cst {dimension_numbers = #tpu.dot_dimension_numbers<[1], [0], [0], [1], [0, 0, 1, 1], [], []>} : vector<8x128xf32>, vector<128x512xf32>, vector<8x512xf32> -> vector<8x512xf32>
    %c0_3 = arith.constant 0 : index
    %c0_4 = arith.constant 0 : index
    %3 = vector.load %arg2[%c0_3, %c0_4] : memref<8x128xf32, #tpu.memory_space<vmem>>, vector<8x128xf32>
    %c0_5 = arith.constant 0 : index
    %c0_6 = arith.constant 0 : index
    %4 = vector.load %arg5[%c0_5, %c0_6] : memref<128x512xf32, #tpu.memory_space<vmem>>, vector<128x512xf32>
    %cst_7 = arith.constant dense<0.000000e+00> : vector<8x512xf32>
    %5 = tpu.matmul %3, %4, %cst_7 {dimension_numbers = #tpu.dot_dimension_numbers<[1], [0], [0], [1], [0, 0, 1, 1], [], []>} : vector<8x128xf32>, vector<128x512xf32>, vector<8x512xf32> -> vector<8x512xf32>
    %6 = arith.addf %2, %5 : vector<8x512xf32>
    %c0_8 = arith.constant 0 : index
    %c0_9 = arith.constant 0 : index
    %7 = vector.load %arg3[%c0_8, %c0_9] : memref<8x128xf32, #tpu.memory_space<vmem>>, vector<8x128xf32>
    %c0_10 = arith.constant 0 : index
    %c0_11 = arith.constant 0 : index
    %8 = vector.load %arg6[%c0_10, %c0_11] : memref<1x512xf32, #tpu.memory_space<vmem>>, vector<1x512xf32>
    %c0_12 = arith.constant 0 : index
    %c0_13 = arith.constant 0 : index
    %9 = vector.load %arg7[%c0_12, %c0_13] : memref<1x512xf32, #tpu.memory_space<vmem>>, vector<1x512xf32>
    %cst_14 = arith.constant dense<0.000000e+00> : vector<8xf32>
    %10 = vector.multi_reduction <add>, %6, %cst_14 [1] : vector<8x512xf32> to vector<8xf32>
    %11 = vector.shape_cast %10 : vector<8xf32> to vector<8x1xf32>
    %12 = arith.mulf %6, %6 : vector<8x512xf32>
    %cst_15 = arith.constant dense<0.000000e+00> : vector<8xf32>
    %13 = vector.multi_reduction <add>, %12, %cst_15 [1] : vector<8x512xf32> to vector<8xf32>
    %14 = vector.shape_cast %13 : vector<8xf32> to vector<8x1xf32>
    %cst_16 = arith.constant 7.812500e-03 : f32
    %15 = vector.broadcast %cst_16 : f32 to vector<8x1xf32>
    %16 = arith.mulf %11, %15 : vector<8x1xf32>
    %cst_17 = arith.constant 7.812500e-03 : f32
    %17 = vector.broadcast %cst_17 : f32 to vector<8x1xf32>
    %18 = arith.mulf %14, %17 : vector<8x1xf32>
    %19 = arith.mulf %16, %16 : vector<8x1xf32>
    %20 = arith.subf %18, %19 : vector<8x1xf32>
    %cst_18 = arith.constant 9.99999974E-6 : f32
    %21 = vector.broadcast %cst_18 : f32 to vector<8x1xf32>
    %22 = arith.addf %20, %21 : vector<8x1xf32>
    %23 = math.rsqrt %22 : vector<8x1xf32>
    %24 = vector.broadcast %8 : vector<1x512xf32> to vector<8x512xf32>
    %25 = vector.broadcast %23 : vector<8x1xf32> to vector<8x512xf32>
    %26 = arith.mulf %24, %25 : vector<8x512xf32>
    %27 = arith.mulf %6, %26 : vector<8x512xf32>
    %28 = vector.broadcast %16 : vector<8x1xf32> to vector<8x512xf32>
    %29 = arith.mulf %28, %26 : vector<8x512xf32>
    %30 = vector.broadcast %9 : vector<1x512xf32> to vector<8x512xf32>
    %31 = arith.subf %30, %29 : vector<8x512xf32>
    %32 = arith.addf %27, %31 : vector<8x512xf32>
    %33 = vector.extract_strided_slice %32 {offsets = [0, 0], sizes = [8, 128], strides = [1, 1]} : vector<8x512xf32> to vector<8x128xf32>
    %34 = arith.negf %33 : vector<8x128xf32>
    %35 = math.exp %34 : vector<8x128xf32>
    %cst_19 = arith.constant 1.000000e+00 : f32
    %36 = vector.broadcast %cst_19 : f32 to vector<8x128xf32>
    %37 = arith.addf %36, %35 : vector<8x128xf32>
    %38 = arith.divf %36, %37 : vector<8x128xf32>
    %39 = vector.extract_strided_slice %32 {offsets = [0, 128], sizes = [8, 128], strides = [1, 1]} : vector<8x512xf32> to vector<8x128xf32>
    %40 = arith.negf %39 : vector<8x128xf32>
    %41 = math.exp %40 : vector<8x128xf32>
    %cst_20 = arith.constant 1.000000e+00 : f32
    %42 = vector.broadcast %cst_20 : f32 to vector<8x128xf32>
    %43 = arith.addf %42, %41 : vector<8x128xf32>
    %44 = arith.divf %42, %43 : vector<8x128xf32>
    %45 = vector.extract_strided_slice %32 {offsets = [0, 256], sizes = [8, 128], strides = [1, 1]} : vector<8x512xf32> to vector<8x128xf32>
    %46 = arith.negf %45 : vector<8x128xf32>
    %47 = math.exp %46 : vector<8x128xf32>
    %cst_21 = arith.constant 1.000000e+00 : f32
    %48 = vector.broadcast %cst_21 : f32 to vector<8x128xf32>
    %49 = arith.addf %48, %47 : vector<8x128xf32>
    %50 = arith.divf %48, %49 : vector<8x128xf32>
    %51 = vector.extract_strided_slice %32 {offsets = [0, 384], sizes = [8, 128], strides = [1, 1]} : vector<8x512xf32> to vector<8x128xf32>
    %cst_22 = arith.constant 5.000000e-01 : f32
    %52 = vector.broadcast %cst_22 : f32 to vector<8x128xf32>
    %53 = arith.mulf %52, %51 : vector<8x128xf32>
    %cst_23 = arith.constant 0.707106769 : f32
    %54 = vector.broadcast %cst_23 : f32 to vector<8x128xf32>
    %55 = arith.mulf %51, %54 : vector<8x128xf32>
    %56 = math.erf %55 : vector<8x128xf32>
    %cst_24 = arith.constant 1.000000e+00 : f32
    %57 = vector.broadcast %cst_24 : f32 to vector<8x128xf32>
    %58 = arith.addf %57, %56 : vector<8x128xf32>
    %59 = arith.mulf %53, %58 : vector<8x128xf32>
    %60 = arith.mulf %38, %7 : vector<8x128xf32>
    %61 = arith.mulf %44, %59 : vector<8x128xf32>
    %62 = arith.addf %60, %61 : vector<8x128xf32>
    %63 = arith.mulf %50, %62 : vector<8x128xf32>
    %c0_25 = arith.constant 0 : index
    %c0_26 = arith.constant 0 : index
    %64 = vector.load %arg8[%c0_25, %c0_26] : memref<8x128xf32, #tpu.memory_space<vmem>>, vector<8x128xf32>
    tpu.vector_store %arg8[%c0_25, %c0_26], %63 {strides = array<i32>} : memref<8x128xf32, #tpu.memory_space<vmem>>, vector<8x128xf32>,
    %c0_27 = arith.constant 0 : index
    %c0_28 = arith.constant 0 : index
    %65 = vector.load %arg9[%c0_27, %c0_28] : memref<8x128xf32, #tpu.memory_space<vmem>>, vector<8x128xf32>
    tpu.vector_store %arg9[%c0_27, %c0_28], %62 {strides = array<i32>} : memref<8x128xf32, #tpu.memory_space<vmem>>, vector<8x128xf32>,
    return
  }
  func.func @transform_0(%arg0: i32) -> (i32, i32) {
    %c0_i32 = arith.constant 0 : i32
    %c0_i32_0 = arith.constant 0 : i32
    return %arg0, %c0_i32 : i32, i32
  }
  func.func @transform_1(%arg0: i32) -> (i32, i32) {
    %c0_i32 = arith.constant 0 : i32
    %c0_i32_0 = arith.constant 0 : i32
    return %arg0, %c0_i32 : i32, i32
  }
  func.func @transform_2(%arg0: i32) -> (i32, i32) {
    %c0_i32 = arith.constant 0 : i32
    %c0_i32_0 = arith.constant 0 : i32
    return %arg0, %c0_i32 : i32, i32
  }
  func.func @transform_3(%arg0: i32) -> (i32, i32) {
    %c0_i32 = arith.constant 0 : i32
    %c0_i32_0 = arith.constant 0 : i32
    %c0_i32_1 = arith.constant 0 : i32
    return %c0_i32, %c0_i32_0 : i32, i32
  }
  func.func @transform_4(%arg0: i32) -> (i32, i32) {
    %c0_i32 = arith.constant 0 : i32
    %c0_i32_0 = arith.constant 0 : i32
    %c0_i32_1 = arith.constant 0 : i32
    return %c0_i32, %c0_i32_0 : i32, i32
  }
  func.func @transform_5(%arg0: i32) -> (i32, i32) {
    %c0_i32 = arith.constant 0 : i32
    %c0_i32_0 = arith.constant 0 : i32
    %c0_i32_1 = arith.constant 0 : i32
    return %c0_i32, %c0_i32_0 : i32, i32
  }
  func.func @transform_6(%arg0: i32) -> (i32, i32) {
    %c0_i32 = arith.constant 0 : i32
    %c0_i32_0 = arith.constant 0 : i32
    %c0_i32_1 = arith.constant 0 : i32
    return %c0_i32, %c0_i32_0 : i32, i32
  }
  func.func @transform_7(%arg0: i32) -> (i32, i32) {
    %c0_i32 = arith.constant 0 : i32
    %c0_i32_0 = arith.constant 0 : i32
    return %arg0, %c0_i32 : i32, i32
  }
  func.func @transform_8(%arg0: i32) -> (i32, i32) {
    %c0_i32 = arith.constant 0 : i32
    %c0_i32_0 = arith.constant 0 : i32
    return %arg0, %c0_i32 : i32, i32
  }
}

</mosaic_0001>

<bundles_post_ra>
// kernel: tpu_custom_call.1
= control target key start
LH: loop header
LB: loop body
LE: loop exit
PB: predicated region body
PF: predicated region fallthrough
CT: control target
= control target key end

     0   :  { %14 = vsyncpa [#allocation3], 0  ;;  %s1131_s0 = inlined_call_operand.vmem [shape: f32[8,128], index: 0, kind: input, shape index: {}]   ;;  %s1132_s1 = inlined_call_operand.vmem [shape: f32[8,128], index: 1, kind: input, shape index: {}]   ;;  %s1133_s2 = inlined_call_operand.hbm [shape: f32[8,128], index: 2, kind: input, shape index: {}, may-alias: {2,8}]   ;;  %s1134_s3 = inlined_call_operand.hbm [shape: f32[128,512], index: 3, kind: input, shape index: {}]   ;;  %s1135_s4 = inlined_call_operand.hbm [shape: f32[128,512], index: 4, kind: input, shape index: {}]   ;;  %s1136_s5 = inlined_call_operand.hbm [shape: f32[1,512], index: 5, kind: input, shape index: {}]   ;;  %s1137_s6 = inlined_call_operand.hbm [shape: f32[1,512], index: 6, kind: input, shape index: {}]   ;;  %s1138_s7 = inlined_call_operand.hbm [shape: f32[8,128], index: 7, kind: output, shape index: {0}]   ;;  %s1139_s8 = inlined_call_operand.hbm [shape: f32[8,128], index: 8, kind: output, shape index: {1}, may-alias: {2,8}]  }
   0x1   :  { %15 = vsyncpa [#allocation6], 0 }
   0x2   :  { %16 = vsyncpa [#allocation9], 0 }
   0x3   :  { %17 = vsyncpa [#allocation4], 0 }
   0x4   :  { %18 = vsyncpa [#allocation13], 0  ;;  %s976_s27 = smov [#allocation5]   ;;  %s812_s9 = scalar_lea.hbm %s1134_s3, 8192 }
   0x5   :  { %s38_s28 = sshll.u32 %s976_s27, 4  ;;  %p813_p0 = scmp.ne.s32.totalorder %s1134_s3, %s812_s9  ;;  %s39_s28 = int_to_ptr.vmem [resolvable:$true] %s38_s28 }
   0x6   :  { %p816_p1 = scmp.lt.u32.totalorder %s812_s9, %s1134_s3 }
   0x8   :  { %p818_p2 = pnand %p816_p1, %p813_p0 }
   0xa   :  { %821 = shalt.err (!%p818_p2)
}
   0xb   :  { %s822_s14 = scalar_lea.vmem %s39_s28, 8192  ;;  %p827_p4 = scmp.lt.s32.totalorder %s39_s28, %s39_s28 }
   0xc   :  { %p823_p3 = scmp.ne.s32.totalorder %s39_s28, %s822_s14  ;;  %p828_p5 = scmp.lt.s32.totalorder %s822_s14, %s822_s14 }
   0xe   :  { %p829_p6 = por %p828_p5, %p827_p4 }
  0x10   :  { %p830_p7 = pnand %p829_p6, %p823_p3 }
  0x12   :  { %833 = shalt.err (!%p830_p7)
}
  0x13   :  { %s977_s15 = smov 512   ;;  %s978_s16 = smov 32  }
  0x14   :  { %44 = dma.hbm_to_vmem [thread:$0]  %s1134_s3, 8192, %s39_s28, [#allocation6], %s977_s15, %s977_s15, %s978_s16  }
  0x15   :  { %s979_s19 = smov [#allocation8]   ;;  %s980_s21 = smov [#allocation2]  }
  0x16   :  { %s63_s20 = sshll.u32 %s979_s19, 4  ;;  %s29_s22 = sshll.u32 %s980_s21, 4  ;;  %s64_s20 = int_to_ptr.vmem [resolvable:$true] %s63_s20  ;;  %s30_s22 = int_to_ptr.vmem [resolvable:$true] %s29_s22 }
  0x17   :  { %s834_s25 = scalar_lea.hbm %s1136_s5, 64 }
  0x18   :  { %p835_p8 = scmp.ne.s32.totalorder %s1136_s5, %s834_s25  ;;  %p838_p9 = scmp.lt.u32.totalorder %s834_s25, %s1136_s5 }
  0x1a   :  { %p840_p10 = pnand %p838_p9, %p835_p8 }
  0x1c   :  { %843 = shalt.err (!%p840_p10)
}
  0x1d   :  { %s844_s3 = scalar_lea.vmem %s64_s20, 64  ;;  %p849_p12 = scmp.lt.s32.totalorder %s64_s20, %s64_s20 }
  0x1e   :  { %p845_p11 = scmp.ne.s32.totalorder %s64_s20, %s844_s3  ;;  %p850_p13 = scmp.lt.s32.totalorder %s844_s3, %s844_s3 }
  0x20   :  { %p851_p0 = por %p850_p13, %p849_p12 }
  0x22   :  { %p852_p1 = pnand %p851_p0, %p845_p11 }
  0x24   :  { %855 = shalt.err (!%p852_p1)
}
  0x25   :  { %66 = dma.hbm_to_vmem [thread:$0]  %s1136_s5, 64, %s64_s20, [#allocation9]  }
  0x26   :  { %s856_s12 = scalar_lea.hbm %s1133_s2, 128 }
  0x27   :  { %p857_p2 = scmp.ne.s32.totalorder %s1133_s2, %s856_s12  ;;  %p860_p3 = scmp.lt.u32.totalorder %s856_s12, %s1133_s2 }
  0x29   :  { %p862_p4 = pnand %p860_p3, %p857_p2 }
  0x2b   :  { %865 = shalt.err (!%p862_p4)
}
  0x2c   :  { %s866_s19 = scalar_lea.vmem %s30_s22, 128  ;;  %p871_p6 = scmp.lt.s32.totalorder %s30_s22, %s30_s22 }
  0x2d   :  { %p867_p5 = scmp.ne.s32.totalorder %s30_s22, %s866_s19  ;;  %p872_p7 = scmp.lt.s32.totalorder %s866_s19, %s866_s19 }
  0x2f   :  { %p873_p8 = por %p872_p7, %p871_p6 }
  0x31   :  { %p874_p9 = pnand %p873_p8, %p867_p5 }
  0x33   :  { %877 = shalt.err (!%p874_p9)
}
  0x34   :  { %32 = dma.hbm_to_vmem [thread:$0]  %s1133_s2, 128, %s30_s22, [#allocation3]  }
  0x35   :  { %s981_s21 = smov [#allocation7]   ;;  %s982_s24 = smov [#allocation10]  }
  0x36   :  { %s50_s23 = sshll.u32 %s981_s21, 4  ;;  %s73_s25 = sshll.u32 %s982_s24, 4  ;;  %s51_s23 = int_to_ptr.vmem [resolvable:$true] %s50_s23  ;;  %s74_s25 = int_to_ptr.vmem [resolvable:$true] %s73_s25 }
  0x37   :  { %s878_s29 = scalar_lea.hbm %s1135_s4, 8192 }
  0x38   :  { %p879_p10 = scmp.ne.s32.totalorder %s1135_s4, %s878_s29  ;;  %p882_p11 = scmp.lt.u32.totalorder %s878_s29, %s1135_s4 }
  0x3a   :  { %p884_p12 = pnand %p882_p11, %p879_p10 }
  0x3c   :  { %887 = shalt.err (!%p884_p12)
}
  0x3d   :  { %s888_s2 = scalar_lea.vmem %s51_s23, 8192  ;;  %p893_p0 = scmp.lt.s32.totalorder %s51_s23, %s51_s23 }
  0x3e   :  { %p889_p13 = scmp.ne.s32.totalorder %s51_s23, %s888_s2  ;;  %p894_p1 = scmp.lt.s32.totalorder %s888_s2, %s888_s2 }
  0x40   :  { %p895_p2 = por %p894_p1, %p893_p0 }
  0x42   :  { %p896_p3 = pnand %p895_p2, %p889_p13 }
  0x44   :  { %899 = shalt.err (!%p896_p3)
}
  0x45   :  { %56 = dma.hbm_to_vmem [thread:$0]  %s1135_s4, 8192, %s51_s23, [#allocation6], %s977_s15, %s977_s15, %s978_s16  }
  0x46   :  { %s900_s13 = scalar_lea.hbm %s1137_s6, 64 }
  0x47   :  { %p901_p4 = scmp.ne.s32.totalorder %s1137_s6, %s900_s13  ;;  %p904_p5 = scmp.lt.u32.totalorder %s900_s13, %s1137_s6 }
  0x49   :  { %p906_p6 = pnand %p904_p5, %p901_p4 }
  0x4b   :  { %909 = shalt.err (!%p906_p6)
}
  0x4c   :  { %s910_s5 = scalar_lea.vmem %s74_s25, 64  ;;  %p915_p8 = scmp.lt.s32.totalorder %s74_s25, %s74_s25 }
  0x4d   :  { %p911_p7 = scmp.ne.s32.totalorder %s74_s25, %s910_s5  ;;  %p916_p9 = scmp.lt.s32.totalorder %s910_s5, %s910_s5 }
  0x4f   :  { %p917_p10 = por %p916_p9, %p915_p8 }
  0x51   :  { %p918_p11 = pnand %p917_p10, %p911_p7 }
  0x53   :  { %921 = shalt.err (!%p918_p11)
}
  0x54   :  { %76 = dma.hbm_to_vmem [thread:$0]  %s1137_s6, 64, %s74_s25, [#allocation9]  }
  0x55   :  { %966 = dma.done.wait [#allocation3], 128  }
  0x56   :  { %967 = vsyncadd [#allocation3], 4294967168 }
  0x57   :  { %968 = dma.done.wait [#allocation6], 16384  }
  0x58   :  { %969 = vsyncadd [#allocation6], 4294950912 }
  0x59   :  { %970 = dma.done.wait [#allocation9], 128  }
  0x5a   :  { %971 = vsyncadd [#allocation9], 4294967168  ;;  %v983_v0 = vmov 0.0   ;;  %v159_v1 = vld [vmem:[#allocation7 + $0x8] sm:$0xff]  ;;  %v161_v3 = vld [vmem:[#allocation7 + $0x18] sm:$0xff]  ;;  %s985_s23 = smov [#allocation11]  }
  0x5b   :  { %286 = vmatprep.mubr.f32.mxu0 %v983_v0  ;;  %357 = vmatprep.mubr.f32.mxu1 %v983_v0  ;;  %v163_v2 = vld [vmem:[#allocation7 + $0x28] sm:$0xff]  ;;  %v165_v5 = vld [vmem:[#allocation7 + $0x38] sm:$0xff]  ;;  %v158_v6 = vld [vmem:[#allocation7] sm:$0xff]  ;;  %s626_s24 = sshll.u32 %s985_s23, 4  ;;  %s627_s24 = int_to_ptr.vmem [resolvable:$true] %s626_s24 }
  0x5c   :  { %v654_v4 = vpack.c.bf16 %v163_v2, %v159_v1  ;;  %v162_v7 = vld [vmem:[#allocation7 + $0x20] sm:$0xff]  ;;  %v686_v8 = vpack.c.bf16 %v165_v5, %v161_v3  ;;  %v160_v10 = vld [vmem:[#allocation7 + $0x10] sm:$0xff]  ;;  %v167_v12 = vld [vmem:[#allocation7 + $0x48] sm:$0xff] }
  0x5d   :  { %v656_v9 = vpack.c.bf16 %v162_v7, %v158_v6  ;;  %v164_v11 = vld [vmem:[#allocation7 + $0x30] sm:$0xff]  ;;  %v171_v14 = vld [vmem:[#allocation7 + $0x68] sm:$0xff]  ;;  %v169_v15 = vld [vmem:[#allocation7 + $0x58] sm:$0xff] }
  0x5e   :  { %655 = vmatprep.subr.bf16.mxu0 %v654_v4  ;;  %v688_v13 = vpack.c.bf16 %v164_v11, %v160_v10  ;;  %v173_v16 = vld [vmem:[#allocation7 + $0x78] sm:$0xff]  ;;  %687 = vmatprep.subr.bf16.mxu1 %v686_v8  ;;  %v658_v17 = vpack.c.bf16 %v171_v14, %v167_v12  ;;  %v166_v19 = vld [vmem:[#allocation7 + $0x40] sm:$0xff]  ;;  %v168_v21 = vld [vmem:[#allocation7 + $0x50] sm:$0xff] }
  0x5f   :  { %657 = vmatpush1.bf16.msra.mxu0 %v656_v9  ;;  %v690_v18 = vpack.c.bf16 %v173_v16, %v169_v15  ;;  %v170_v20 = vld [vmem:[#allocation7 + $0x60] sm:$0xff]  ;;  %v172_v23 = vld [vmem:[#allocation7 + $0x70] sm:$0xff]  ;;  %v175_v24 = vld [vmem:[#allocation7 + $0x88] sm:$0xff] }
  0x60   :  { %689 = vmatpush1.bf16.msra.mxu1 %v688_v13  ;;  %v660_v22 = vpack.c.bf16 %v170_v20, %v166_v19  ;;  %v179_v25 = vld [vmem:[#allocation7 + $0xa8] sm:$0xff]  ;;  %659 = vmatprep.subr.bf16.mxu0 %v658_v17  ;;  %v692_v26 = vpack.c.bf16 %v172_v23, %v168_v21  ;;  %v177_v28 = vld [vmem:[#allocation7 + $0x98] sm:$0xff]  ;;  %v174_v30 = vld [vmem:[#allocation7 + $0x80] sm:$0xff] }
  0x61   :  { %691 = vmatprep.subr.bf16.mxu1 %v690_v18  ;;  %v662_v27 = vpack.c.bf16 %v179_v25, %v175_v24  ;;  %v181_v29 = vld [vmem:[#allocation7 + $0xb8] sm:$0xff]  ;;  %v178_v32 = vld [vmem:[#allocation7 + $0xa0] sm:$0xff]  ;;  %v176_v33 = vld [vmem:[#allocation7 + $0x90] sm:$0xff] }
  0x62   :  { %v694_v31 = vpack.c.bf16 %v181_v29, %v177_v28  ;;  %v180_v34 = vld [vmem:[#allocation7 + $0xb0] sm:$0xff]  ;;  %v664_v35 = vpack.c.bf16 %v178_v32, %v174_v30  ;;  %v183_v36 = vld [vmem:[#allocation7 + $0xc8] sm:$0xff]  ;;  %v185_v38 = vld [vmem:[#allocation7 + $0xd8] sm:$0xff] }
  0x63   :  { %661 = vmatpush1.bf16.msra.mxu0 %v660_v22  ;;  %v187_v37 = vld [vmem:[#allocation7 + $0xe8] sm:$0xff]  ;;  %v696_v39 = vpack.c.bf16 %v180_v34, %v176_v33  ;;  %v189_v41 = vld [vmem:[#allocation7 + $0xf8] sm:$0xff]  ;;  %v182_v42 = vld [vmem:[#allocation7 + $0xc0] sm:$0xff] }
  0x64   :  { %693 = vmatpush1.bf16.msra.mxu1 %v692_v26  ;;  %663 = vmatprep.subr.bf16.mxu0 %v662_v27  ;;  %v666_v40 = vpack.c.bf16 %v187_v37, %v183_v36  ;;  %v186_v43 = vld [vmem:[#allocation7 + $0xe0] sm:$0xff]  ;;  %v698_v44 = vpack.c.bf16 %v189_v41, %v185_v38  ;;  %v184_v45 = vld [vmem:[#allocation7 + $0xd0] sm:$0xff]  ;;  %v191_v47 = vld [vmem:[#allocation7 + $0x108] sm:$0xff] }
  0x65   :  { %695 = vmatprep.subr.bf16.mxu1 %v694_v31  ;;  %v188_v46 = vld [vmem:[#allocation7 + $0xf0] sm:$0xff]  ;;  %v195_v48 = vld [vmem:[#allocation7 + $0x128] sm:$0xff]  ;;  %v193_v49 = vld [vmem:[#allocation7 + $0x118] sm:$0xff]  ;;  %v668_v51 = vpack.c.bf16 %v186_v43, %v182_v42 }
  0x66   :  { %v197_v50 = vld [vmem:[#allocation7 + $0x138] sm:$0xff]  ;;  %v700_v52 = vpack.c.bf16 %v188_v46, %v184_v45  ;;  %v670_v53 = vpack.c.bf16 %v195_v48, %v191_v47  ;;  %v190_v54 = vld [vmem:[#allocation7 + $0x100] sm:$0xff]  ;;  %v192_v56 = vld [vmem:[#allocation7 + $0x110] sm:$0xff] }
  0x67   :  { %665 = vmatpush1.bf16.msra.mxu0 %v664_v35  ;;  %v194_v55 = vld [vmem:[#allocation7 + $0x120] sm:$0xff]  ;;  %v702_v57 = vpack.c.bf16 %v197_v50, %v193_v49  ;;  %v196_v58 = vld [vmem:[#allocation7 + $0x130] sm:$0xff]  ;;  %v199_v59 = vld [vmem:[#allocation7 + $0x148] sm:$0xff] }
  0x68   :  { %697 = vmatpush1.bf16.msra.mxu1 %v696_v39  ;;  %667 = vmatprep.subr.bf16.mxu0 %v666_v40  ;;  %v203_v60 = vld [vmem:[#allocation7 + $0x168] sm:$0xff]  ;;  %v201_v61 = vld [vmem:[#allocation7 + $0x158] sm:$0xff]  ;;  %v672_v63 = vpack.c.bf16 %v194_v55, %v190_v54  ;;  %v704_v1 = vpack.c.bf16 %v196_v58, %v192_v56  ;;  %v198_v3 = vld [vmem:[#allocation7 + $0x140] sm:$0xff] }
  0x69   :  { %699 = vmatprep.subr.bf16.mxu1 %v698_v44  ;;  %v205_v62 = vld [vmem:[#allocation7 + $0x178] sm:$0xff]  ;;  %v674_v2 = vpack.c.bf16 %v203_v60, %v199_v59  ;;  %v202_v4 = vld [vmem:[#allocation7 + $0x160] sm:$0xff]  ;;  %v200_v5 = vld [vmem:[#allocation7 + $0x150] sm:$0xff] }
  0x6a   :  { %v706_v6 = vpack.c.bf16 %v205_v62, %v201_v61  ;;  %v204_v7 = vld [vmem:[#allocation7 + $0x170] sm:$0xff]  ;;  %v207_v8 = vld [vmem:[#allocation7 + $0x188] sm:$0xff]  ;;  %v209_v10 = vld [vmem:[#allocation7 + $0x198] sm:$0xff]  ;;  %v676_v12 = vpack.c.bf16 %v202_v4, %v198_v3 }
  0x6b   :  { %669 = vmatpush1.bf16.msra.mxu0 %v668_v51  ;;  %v211_v9 = vld [vmem:[#allocation7 + $0x1a8] sm:$0xff]  ;;  %v213_v11 = vld [vmem:[#allocation7 + $0x1b8] sm:$0xff]  ;;  %v708_v13 = vpack.c.bf16 %v204_v7, %v200_v5  ;;  %v206_v15 = vld [vmem:[#allocation7 + $0x180] sm:$0xff] }
  0x6c   :  { %701 = vmatpush1.bf16.msra.mxu1 %v700_v52  ;;  %671 = vmatprep.subr.bf16.mxu0 %v670_v53  ;;  %v678_v14 = vpack.c.bf16 %v211_v9, %v207_v8  ;;  %v210_v16 = vld [vmem:[#allocation7 + $0x1a0] sm:$0xff]  ;;  %v208_v17 = vld [vmem:[#allocation7 + $0x190] sm:$0xff]  ;;  %v710_v18 = vpack.c.bf16 %v213_v11, %v209_v10  ;;  %v215_v20 = vld [vmem:[#allocation7 + $0x1c8] sm:$0xff] }
  0x6d   :  { %703 = vmatprep.subr.bf16.mxu1 %v702_v57  ;;  %v212_v19 = vld [vmem:[#allocation7 + $0x1b0] sm:$0xff]  ;;  %v219_v21 = vld [vmem:[#allocation7 + $0x1e8] sm:$0xff]  ;;  %v217_v22 = vld [vmem:[#allocation7 + $0x1d8] sm:$0xff]  ;;  %v680_v24 = vpack.c.bf16 %v210_v16, %v206_v15 }
  0x6e   :  { %v221_v23 = vld [vmem:[#allocation7 + $0x1f8] sm:$0xff]  ;;  %v712_v25 = vpack.c.bf16 %v212_v19, %v208_v17  ;;  %v682_v26 = vpack.c.bf16 %v219_v21, %v215_v20  ;;  %v214_v27 = vld [vmem:[#allocation7 + $0x1c0] sm:$0xff]  ;;  %v216_v29 = vld [vmem:[#allocation7 + $0x1d0] sm:$0xff] }
  0x6f   :  { %673 = vmatpush1.bf16.msra.mxu0 %v672_v63  ;;  %v218_v28 = vld [vmem:[#allocation7 + $0x1e0] sm:$0xff]  ;;  %v714_v30 = vpack.c.bf16 %v221_v23, %v217_v22  ;;  %v220_v31 = vld [vmem:[#allocation7 + $0x1f0] sm:$0xff]  ;;  %v94_v32 = vld [vmem:[#allocation5 + $0x8] sm:$0xff] }
  0x70   :  { %705 = vmatpush1.bf16.msra.mxu1 %v704_v1  ;;  %675 = vmatprep.subr.bf16.mxu0 %v674_v2  ;;  %v98_v33 = vld [vmem:[#allocation5 + $0x28] sm:$0xff]  ;;  %v96_v34 = vld [vmem:[#allocation5 + $0x18] sm:$0xff]  ;;  %v684_v36 = vpack.c.bf16 %v218_v28, %v214_v27  ;;  %v716_v37 = vpack.c.bf16 %v220_v31, %v216_v29  ;;  %v93_v39 = vld [vmem:[#allocation5] sm:$0xff] }
  0x71   :  { %707 = vmatprep.subr.bf16.mxu1 %v706_v6  ;;  %v100_v35 = vld [vmem:[#allocation5 + $0x38] sm:$0xff]  ;;  %v718_v38 = vpack.c.bf16 %v98_v33, %v94_v32  ;;  %v97_v40 = vld [vmem:[#allocation5 + $0x20] sm:$0xff]  ;;  %v95_v41 = vld [vmem:[#allocation5 + $0x10] sm:$0xff] }
  0x72   :  { %v750_v42 = vpack.c.bf16 %v100_v35, %v96_v34  ;;  %v99_v43 = vld [vmem:[#allocation5 + $0x30] sm:$0xff]  ;;  %v102_v44 = vld [vmem:[#allocation5 + $0x48] sm:$0xff]  ;;  %v104_v46 = vld [vmem:[#allocation5 + $0x58] sm:$0xff]  ;;  %v720_v49 = vpack.c.bf16 %v97_v40, %v93_v39 }
  0x73   :  { %677 = vmatpush1.bf16.msra.mxu0 %v676_v12  ;;  %v106_v45 = vld [vmem:[#allocation5 + $0x68] sm:$0xff]  ;;  %v108_v47 = vld [vmem:[#allocation5 + $0x78] sm:$0xff]  ;;  %v752_v50 = vpack.c.bf16 %v99_v43, %v95_v41  ;;  %v101_v52 = vld [vmem:[#allocation5 + $0x40] sm:$0xff] }
  0x74   :  { %709 = vmatpush1.bf16.msra.mxu1 %v708_v13  ;;  %679 = vmatprep.subr.bf16.mxu0 %v678_v14  ;;  %v157_v48 = vld [vmem:[%s1132_s1] sm:$0xff]  ;;  %v722_v51 = vpack.c.bf16 %v106_v45, %v102_v44  ;;  %v105_v53 = vld [vmem:[#allocation5 + $0x60] sm:$0xff]  ;;  %v103_v54 = vld [vmem:[#allocation5 + $0x50] sm:$0xff]  ;;  %v754_v55 = vpack.c.bf16 %v108_v47, %v104_v46 }
  0x75   :  { %711 = vmatprep.subr.bf16.mxu1 %v710_v18  ;;  %v107_v56 = vld [vmem:[#allocation5 + $0x70] sm:$0xff]  ;;  %v110_v57 = vld [vmem:[#allocation5 + $0x88] sm:$0xff]  ;;  %v112_v59 = vld [vmem:[#allocation5 + $0x98] sm:$0xff]  ;;  %v724_v61 = vpack.c.bf16 %v105_v53, %v101_v52 }
  0x76   :  { %v114_v58 = vld [vmem:[#allocation5 + $0xa8] sm:$0xff]  ;;  %v116_v60 = vld [vmem:[#allocation5 + $0xb8] sm:$0xff]  ;;  %v756_v62 = vpack.c.bf16 %v107_v56, %v103_v54  ;;  %v109_v1 = vld [vmem:[#allocation5 + $0x80] sm:$0xff] }
  0x77   :  { %681 = vmatpush1.bf16.msra.mxu0 %v680_v24  ;;  %v726_v63 = vpack.c.bf16 %v114_v58, %v110_v57  ;;  %v113_v2 = vld [vmem:[#allocation5 + $0xa0] sm:$0xff]  ;;  %v111_v3 = vld [vmem:[#allocation5 + $0x90] sm:$0xff]  ;;  %v758_v4 = vpack.c.bf16 %v116_v60, %v112_v59  ;;  %v118_v6 = vld [vmem:[#allocation5 + $0xc8] sm:$0xff] }
  0x78   :  { %713 = vmatpush1.bf16.msra.mxu1 %v712_v25  ;;  %683 = vmatprep.subr.bf16.mxu0 %v682_v26  ;;  %v115_v5 = vld [vmem:[#allocation5 + $0xb0] sm:$0xff]  ;;  %v122_v7 = vld [vmem:[#allocation5 + $0xe8] sm:$0xff]  ;;  %v120_v8 = vld [vmem:[#allocation5 + $0xd8] sm:$0xff]  ;;  %v728_v10 = vpack.c.bf16 %v113_v2, %v109_v1 }
  0x79   :  { %715 = vmatprep.subr.bf16.mxu1 %v714_v30  ;;  %v124_v9 = vld [vmem:[#allocation5 + $0xf8] sm:$0xff]  ;;  %v760_v11 = vpack.c.bf16 %v115_v5, %v111_v3  ;;  %v730_v12 = vpack.c.bf16 %v122_v7, %v118_v6  ;;  %v117_v13 = vld [vmem:[#allocation5 + $0xc0] sm:$0xff]  ;;  %v119_v15 = vld [vmem:[#allocation5 + $0xd0] sm:$0xff] }
  0x7a   :  { %v121_v14 = vld [vmem:[#allocation5 + $0xe0] sm:$0xff]  ;;  %v762_v16 = vpack.c.bf16 %v124_v9, %v120_v8  ;;  %v123_v17 = vld [vmem:[#allocation5 + $0xf0] sm:$0xff]  ;;  %v126_v18 = vld [vmem:[#allocation5 + $0x108] sm:$0xff] }
  0x7b   :  { %685 = vmatpush1.bf16.msra.mxu0 %v684_v36  ;;  %v130_v19 = vld [vmem:[#allocation5 + $0x128] sm:$0xff]  ;;  %v128_v20 = vld [vmem:[#allocation5 + $0x118] sm:$0xff]  ;;  %v732_v22 = vpack.c.bf16 %v121_v14, %v117_v13  ;;  %v125_v24 = vld [vmem:[#allocation5 + $0x100] sm:$0xff] }
  0x7c   :  { %717 = vmatpush1.bf16.msra.mxu1 %v716_v37  ;;  %719 = vmatprep.subr.bf16.mxu0 %v718_v38  ;;  %v132_v21 = vld [vmem:[#allocation5 + $0x138] sm:$0xff]  ;;  %v734_v23 = vpack.c.bf16 %v130_v19, %v126_v18  ;;  %v129_v25 = vld [vmem:[#allocation5 + $0x120] sm:$0xff]  ;;  %v127_v26 = vld [vmem:[#allocation5 + $0x110] sm:$0xff] }
  0x7d   :  { %751 = vmatprep.subr.bf16.mxu1 %v750_v42  ;;  %v766_v27 = vpack.c.bf16 %v132_v21, %v128_v20  ;;  %v131_v28 = vld [vmem:[#allocation5 + $0x130] sm:$0xff]  ;;  %v134_v29 = vld [vmem:[#allocation5 + $0x148] sm:$0xff]  ;;  %v136_v31 = vld [vmem:[#allocation5 + $0x158] sm:$0xff]  ;;  %v736_v33 = vpack.c.bf16 %v129_v25, %v125_v24 }
  0x7e   :  { %287 = vmatmul.mubr.f32.vlgmr.msra.gmra.mrb[0].mxu0 %v157_v48  ;;  %v138_v30 = vld [vmem:[#allocation5 + $0x168] sm:$0xff]  ;;  %v140_v32 = vld [vmem:[#allocation5 + $0x178] sm:$0xff]  ;;  %v768_v34 = vpack.c.bf16 %v131_v28, %v127_v26  ;;  %v133_v36 = vld [vmem:[#allocation5 + $0x140] sm:$0xff] }
  0x7f   :  { %358 = vmatmul.mubr.f32.vlgmr.msra.gmra.mrb[0].mxu1 %v157_v48  ;;  %721 = vmatpush1.bf16.msra.mxu0 %v720_v49  ;;  %v738_v35 = vpack.c.bf16 %v138_v30, %v134_v29  ;;  %v137_v37 = vld [vmem:[#allocation5 + $0x160] sm:$0xff]  ;;  %v135_v38 = vld [vmem:[#allocation5 + $0x150] sm:$0xff]  ;;  %v770_v39 = vpack.c.bf16 %v140_v32, %v136_v31  ;;  %v142_v41 = vld [vmem:[#allocation5 + $0x188] sm:$0xff] }
  0x80   :  { %753 = vmatpush1.bf16.msra.mxu1 %v752_v50  ;;  %723 = vmatprep.subr.bf16.mxu0 %v722_v51  ;;  %v139_v40 = vld [vmem:[#allocation5 + $0x170] sm:$0xff]  ;;  %v146_v42 = vld [vmem:[#allocation5 + $0x1a8] sm:$0xff]  ;;  %v144_v43 = vld [vmem:[#allocation5 + $0x198] sm:$0xff]  ;;  %v740_v45 = vpack.c.bf16 %v137_v37, %v133_v36 }
  0x81   :  { %755 = vmatprep.subr.bf16.mxu1 %v754_v55  ;;  %428 = vmatprep.mubr.f32.mxu0 %v983_v0  ;;  %v148_v44 = vld [vmem:[#allocation5 + $0x1b8] sm:$0xff]  ;;  %v772_v46 = vpack.c.bf16 %v139_v40, %v135_v38  ;;  %v742_v47 = vpack.c.bf16 %v146_v42, %v142_v41  ;;  %v141_v48 = vld [vmem:[#allocation5 + $0x180] sm:$0xff]  ;;  %v143_v50 = vld [vmem:[#allocation5 + $0x190] sm:$0xff] }
  0x82   :  { %499 = vmatprep.mubr.f32.mxu1 %v983_v0  ;;  %v764_v0 = vpack.c.bf16 %v123_v17, %v119_v15  ;;  %v145_v49 = vld [vmem:[#allocation5 + $0x1a0] sm:$0xff]  ;;  %v774_v51 = vpack.c.bf16 %v148_v44, %v144_v43  ;;  %v147_v52 = vld [vmem:[#allocation5 + $0x1b0] sm:$0xff]  ;;  %v150_v53 = vld [vmem:[#allocation5 + $0x1c8] sm:$0xff] }
  0x83   :  { %725 = vmatpush1.bf16.msra.mxu0 %v724_v61  ;;  %v154_v54 = vld [vmem:[#allocation5 + $0x1e8] sm:$0xff]  ;;  %v152_v55 = vld [vmem:[#allocation5 + $0x1d8] sm:$0xff]  ;;  %v744_v57 = vpack.c.bf16 %v145_v49, %v141_v48  ;;  %v776_v58 = vpack.c.bf16 %v147_v52, %v143_v50  ;;  %v149_v60 = vld [vmem:[#allocation5 + $0x1c0] sm:$0xff] }
  0x84   :  { %757 = vmatpush1.bf16.msra.mxu1 %v756_v62  ;;  %727 = vmatprep.subr.bf16.mxu0 %v726_v63  ;;  %v156_v56 = vld [vmem:[#allocation5 + $0x1f8] sm:$0xff]  ;;  %v746_v59 = vpack.c.bf16 %v154_v54, %v150_v53  ;;  %v153_v61 = vld [vmem:[#allocation5 + $0x1e0] sm:$0xff]  ;;  %v151_v63 = vld [vmem:[#allocation5 + $0x1d0] sm:$0xff] }
  0x85   :  { %759 = vmatprep.subr.bf16.mxu1 %v758_v4  ;;  %v778_v62 = vpack.c.bf16 %v156_v56, %v152_v55  ;;  %v155_v1 = vld [vmem:[#allocation5 + $0x1f0] sm:$0xff]  ;;  %v748_v2 = vpack.c.bf16 %v153_v61, %v149_v60  ;;  %v92_v4 = vld [vmem:[%s1131_s0] sm:$0xff]  ;;  %v507_v31 = vld [vmem:[#allocation8] sm:$0xf]  ;;  %s984_s0 = smov [#allocation12]  }
  0x86   :  { %v780_v3 = vpack.c.bf16 %v155_v1, %v151_v63  ;;  %v508_v36 = vld [vmem:[#allocation10] sm:$0xf]  ;;  %s636_s21 = sshll.u32 %s984_s0, 4  ;;  %s637_s21 = int_to_ptr.vmem [resolvable:$true] %s636_s21 }
  0x87   :  { %729 = vmatpush1.bf16.msra.mxu0 %v728_v10  ;;  %s922_s25 = scalar_lea.vmem %s637_s21, 128  ;;  %p927_p13 = scmp.lt.s32.totalorder %s637_s21, %s637_s21 }
  0x88   :  { %761 = vmatpush1.bf16.msra.mxu1 %v760_v11  ;;  %731 = vmatprep.subr.bf16.mxu0 %v730_v12  ;;  %p923_p12 = scmp.ne.s32.totalorder %s637_s21, %s922_s25  ;;  %p928_p0 = scmp.lt.s32.totalorder %s922_s25, %s922_s25 }
  0x89   :  { %763 = vmatprep.subr.bf16.mxu1 %v762_v16 }
  0x8a   :  { %p929_p1 = por %p928_p0, %p927_p13 }
  0x8b   :  { %733 = vmatpush1.bf16.msra.mxu0 %v732_v22 }
  0x8c   :  { %765 = vmatpush1.bf16.msra.mxu1 %v764_v0  ;;  %735 = vmatprep.subr.bf16.mxu0 %v734_v23  ;;  %v530_v23 = vlaneseq  ;;  %p930_p2 = pnand %p929_p1, %p923_p12 }
  0x8d   :  { %767 = vmatprep.subr.bf16.mxu1 %v766_v27 }
  0x8e   :  { %v531_v26 = vshrl.u32 %v530_v23, 7 }
  0x8f   :  { %737 = vmatpush1.bf16.msra.mxu0 %v736_v33 }
  0x90   :  { %769 = vmatpush1.bf16.msra.mxu1 %v768_v34  ;;  %739 = vmatprep.subr.bf16.mxu0 %v738_v35  ;;  %v532_v27 = vsub.s32 0, %v531_v26  ;;  %v536_v28 = vsub.s32 1, %v531_v26  ;;  %v540_v29 = vsub.s32 2, %v531_v26  ;;  %v544_v30 = vsub.s32 3, %v531_v26 }
  0x91   :  { %771 = vmatprep.subr.bf16.mxu1 %v770_v39 }
  0x92   :  { %v533_v32 = vrot.slane %v507_v31, %v532_v27  ;;  %v537_v33 = vrot.slane %v507_v31, %v536_v28  ;;  %v541_v34 = vrot.slane %v507_v31, %v540_v29  ;;  %v545_v35 = vrot.slane %v507_v31, %v544_v30 }
  0x93   :  { %741 = vmatpush1.bf16.msra.mxu0 %v740_v45  ;;  %v566_v42 = vrot.slane %v508_v36, %v532_v27  ;;  %v570_v43 = vrot.slane %v508_v36, %v536_v28  ;;  %v574_v44 = vrot.slane %v508_v36, %v540_v29  ;;  %v578_v45 = vrot.slane %v508_v36, %v544_v30 }
  0x94   :  { %773 = vmatpush1.bf16.msra.mxu1 %v772_v46  ;;  %743 = vmatprep.subr.bf16.mxu0 %v742_v47 }
  0x95   :  { %775 = vmatprep.subr.bf16.mxu1 %v774_v51 }
  0x97   :  { %745 = vmatpush1.bf16.msra.mxu0 %v744_v57 }
  0x98   :  { %777 = vmatpush1.bf16.msra.mxu1 %v776_v58  ;;  %747 = vmatprep.subr.bf16.mxu0 %v746_v59 }
  0x99   :  { %779 = vmatprep.subr.bf16.mxu1 %v778_v62 }
  0x9b   :  { %749 = vmatpush1.bf16.msra.mxu0 %v748_v2 }
  0x9c   :  { %781 = vmatpush1.bf16.msra.mxu1 %v780_v3 }
  0x9e   :  { %429 = vmatmul.mubr.f32.vlgmr.msra.gmra.mrb[0].mxu0 %v92_v4 }
  0x9f   :  { %500 = vmatmul.mubr.f32.vlgmr.msra.gmra.mrb[0].mxu1 %v92_v4 }
 0x171   :  { %v430_v5 = vpop.f32.mrb[0].mxu0 }
 0x172   :  { %v514_v6 = vmul.f32 %v430_v5, %v430_v5  ;;  %v501_v7 = vpop.f32.mrb[0].mxu1  ;;  %v432_v8 = vpop.f32.mrb[1].mxu0 }
 0x173   :  { %v509_v9 = vadd.f32 %v432_v8, %v430_v5  ;;  %v515_v10 = vmul.f32 %v432_v8, %v432_v8  ;;  %v503_v11 = vpop.f32.mrb[1].mxu1  ;;  %v516_v12 = vmul.f32 %v501_v7, %v501_v7 }
 0x174   :  { %v517_v15 = vmul.f32 %v503_v11, %v503_v11 }
 0x175   :  { %v518_v13 = vadd.f32 %v515_v10, %v514_v6  ;;  %v510_v14 = vadd.f32 %v509_v9, %v501_v7 }
 0x177   :  { %v511_v16 = vadd.f32 %v510_v14, %v503_v11  ;;  %v519_v17 = vadd.f32 %v518_v13, %v516_v12 }
 0x179   :  { %512 = vadd.xlane.f32.xlu0 %v511_v16  ;;  %v520_v18 = vadd.f32 %v519_v17, %v517_v15 }
 0x17d   :  { %521 = vadd.xlane.f32.xlu0 %v520_v18 }
 0x206   :  { %v513_v19 = vpop.xlane.xlu0 %512 }
 0x207   :  { %v523_v20 = vmul.f32 0.0078125, %v513_v19 }
 0x209   :  { %v525_v22 = vmul.f32 %v523_v20, %v523_v20 }
 0x20a   :  { %v522_v21 = vpop.xlane.xlu0 %521 }
 0x20b   :  { %v524_v0 = vmul.f32 0.0078125, %v522_v21 }
 0x20d   :  { %v526_v24 = vsub.f32 %v524_v0, %v525_v22 }
 0x20f   :  { %v527_v25 = vadd.f32 1e-05, %v526_v24 }
 0x211   :  { %796 = vrsqrt.f32 %v527_v25 }
 0x21b   :  { %v797_v37 = vpop.eup %796 }
 0x21c   :  { %v550_v38 = vmul.f32 %v797_v37, %v533_v32  ;;  %v551_v39 = vmul.f32 %v797_v37, %v537_v33  ;;  %v552_v40 = vmul.f32 %v797_v37, %v541_v34  ;;  %v553_v41 = vmul.f32 %v797_v37, %v545_v35 }
 0x21e   :  { %v558_v46 = vmul.f32 %v550_v38, %v523_v20  ;;  %v559_v47 = vmul.f32 %v551_v39, %v523_v20  ;;  %v560_v48 = vmul.f32 %v552_v40, %v523_v20  ;;  %v561_v49 = vmul.f32 %v553_v41, %v523_v20 }
 0x21f   :  { %v554_v50 = vmul.f32 %v550_v38, %v430_v5  ;;  %v555_v51 = vmul.f32 %v551_v39, %v432_v8  ;;  %v556_v52 = vmul.f32 %v552_v40, %v501_v7  ;;  %v557_v57 = vmul.f32 %v553_v41, %v503_v11  ;;  %v506_v11 = vld [vmem:[#allocation2] sm:$0xff] }
 0x220   :  { %v583_v53 = vsub.f32 %v566_v42, %v558_v46  ;;  %v584_v54 = vsub.f32 %v570_v43, %v559_v47  ;;  %v585_v55 = vsub.f32 %v574_v44, %v560_v48  ;;  %v586_v56 = vsub.f32 %v578_v45, %v561_v49 }
 0x222   :  { %v587_v58 = vadd.f32 %v583_v53, %v554_v50  ;;  %v588_v59 = vadd.f32 %v584_v54, %v555_v51  ;;  %v589_v60 = vadd.f32 %v585_v55, %v556_v52  ;;  %v590_v61 = vadd.f32 %v586_v56, %v557_v57 }
 0x224   :  { %v651_v62 = vmul.f32 -1.442695, %v587_v58  ;;  %v652_v63 = vmul.f32 -1.442695, %v588_v59  ;;  %v653_v1 = vmul.f32 -1.442695, %v589_v60 }
 0x225   :  { %v610_v2 = vmul.f32 0.70710677, %v590_v61  ;;  %v609_v12 = vmul.f32 0.5, %v590_v61 }
 0x226   :  { %798 = vpow2.f32 %v651_v62 }
 0x227   :  { %800 = vpow2.f32 %v652_v63 }
 0x228   :  { %802 = vpow2.f32 %v653_v1 }
 0x229   :  { %804 = verf.f32 %v610_v2 }
 0x230   :  { %v799_v3 = vpop.eup %798 }
 0x231   :  { %v801_v4 = vpop.eup %800  ;;  %v594_v5 = vadd.f32 1.0, %v799_v3 }
 0x232   :  { %v803_v6 = vpop.eup %802  ;;  %v600_v7 = vadd.f32 1.0, %v801_v4 }
 0x233   :  { %806 = vrcp.f32 %v594_v5  ;;  %v606_v8 = vadd.f32 1.0, %v803_v6  ;;  %v805_v9 = vpop.eup %804 }
 0x234   :  { %808 = vrcp.f32 %v600_v7  ;;  %v612_v10 = vadd.f32 1.0, %v805_v9 }
 0x235   :  { %810 = vrcp.f32 %v606_v8 }
 0x236   :  { %v613_v14 = vmul.f32 %v612_v10, %v609_v12 }
 0x23d   :  { %v807_v13 = vpop.eup %806 }
 0x23e   :  { %v809_v15 = vpop.eup %808  ;;  %v614_v16 = vmul.f32 %v807_v13, %v506_v11 }
 0x23f   :  { %v615_v17 = vmul.f32 %v809_v15, %v613_v14  ;;  %v811_v19 = vpop.eup %810 }
 0x241   :  { %v616_v18 = vadd.f32 %v615_v17, %v614_v16 }
 0x243   :  { %v617_v20 = vmul.f32 %v811_v19, %v616_v18  ;;  %619 = vst [vmem:[#allocation12] sm:$0xff] %v616_v18 }
 0x244   :  { %933 = shalt.err (!%p930_p2)
}
 0x245   :  { %s934_s29 = scalar_lea.hbm %s1139_s8, 128 }
 0x246   :  { %p935_p3 = scmp.ne.s32.totalorder %s1139_s8, %s934_s29  ;;  %p938_p4 = scmp.lt.u32.totalorder %s934_s29, %s1139_s8 }
 0x248   :  { %p940_p5 = pnand %p938_p4, %p935_p3 }
 0x24a   :  { %943 = shalt.err (!%p940_p5)
}
 0x24b   :  { %639 = dma.vmem_to_hbm [thread:$0]  %s637_s21, 128, %s1139_s8, [#allocation13]   ;;  %618 = vst [vmem:[#allocation11] sm:$0xff] %v617_v20 }
 0x24c   :  { %s944_s10 = scalar_lea.vmem %s627_s24, 128  ;;  %p949_p7 = scmp.lt.s32.totalorder %s627_s24, %s627_s24 }
 0x24d   :  { %p945_p6 = scmp.ne.s32.totalorder %s627_s24, %s944_s10  ;;  %p950_p8 = scmp.lt.s32.totalorder %s944_s10, %s944_s10 }
 0x24f   :  { %p951_p9 = por %p950_p8, %p949_p7 }
 0x251   :  { %p952_p10 = pnand %p951_p9, %p945_p6 }
 0x253   :  { %955 = shalt.err (!%p952_p10)
}
 0x254   :  { %s956_s13 = scalar_lea.hbm %s1138_s7, 128 }
 0x255   :  { %p957_p11 = scmp.ne.s32.totalorder %s1138_s7, %s956_s13  ;;  %p960_p12 = scmp.lt.u32.totalorder %s956_s13, %s1138_s7 }
 0x257   :  { %p962_p13 = pnand %p960_p12, %p957_p11 }
 0x259   :  { %965 = shalt.err (!%p962_p13)
}
 0x25a   :  { %629 = dma.vmem_to_hbm [thread:$0]  %s627_s24, 128, %s1138_s7, [#allocation4]  }
 0x25b   :  { %972 = dma.done.wait [#allocation4], 128  }
 0x25c   :  { %973 = vsyncadd [#allocation4], 4294967168 }
 0x25d   :  { %974 = dma.done.wait [#allocation13], 128  }
 0x25e   :  { %975 = vsyncadd [#allocation13], 4294967168 }
 0x25f   :  { %646 = vsyncpa [#allocation3], 1 }
 0x260   :  { %647 = vsyncpa [#allocation6], 1 }
 0x261   :  { %648 = vsyncpa [#allocation9], 1 }
 0x262   :  { %649 = vsyncpa [#allocation4], 1 }
 0x263   :  { %650 = vsyncpa [#allocation13], 1 }

// kernel: tpu_custom_call.1
= control target key start
LH: loop header
LB: loop body
LE: loop exit
PB: predicated region body
PF: predicated region fallthrough
CT: control target
= control target key end

     0   :  { %14 = vsyncpa [#allocation3], 0  ;;  %s1131_s0 = inlined_call_operand.vmem [shape: f32[8,128], index: 0, kind: input, shape index: {}]   ;;  %s1132_s1 = inlined_call_operand.vmem [shape: f32[8,128], index: 1, kind: input, shape index: {}]   ;;  %s1133_s2 = inlined_call_operand.hbm [shape: f32[8,128], index: 2, kind: input, shape index: {}, may-alias: {2,8}]   ;;  %s1134_s3 = inlined_call_operand.hbm [shape: f32[128,512], index: 3, kind: input, shape index: {}]   ;;  %s1135_s4 = inlined_call_operand.hbm [shape: f32[128,512], index: 4, kind: input, shape index: {}]   ;;  %s1136_s5 = inlined_call_operand.hbm [shape: f32[1,512], index: 5, kind: input, shape index: {}]   ;;  %s1137_s6 = inlined_call_operand.hbm [shape: f32[1,512], index: 6, kind: input, shape index: {}]   ;;  %s1138_s7 = inlined_call_operand.hbm [shape: f32[8,128], index: 7, kind: output, shape index: {0}]   ;;  %s1139_s8 = inlined_call_operand.hbm [shape: f32[8,128], index: 8, kind: output, shape index: {1}, may-alias: {2,8}]  }
   0x1   :  { %15 = vsyncpa [#allocation6], 0 }
   0x2   :  { %16 = vsyncpa [#allocation9], 0 }
   0x3   :  { %17 = vsyncpa [#allocation4], 0 }
   0x4   :  { %18 = vsyncpa [#allocation13], 0  ;;  %s976_s27 = smov [#allocation5]   ;;  %s812_s9 = scalar_lea.hbm %s1134_s3, 8192 }
   0x5   :  { %s38_s28 = sshll.u32 %s976_s27, 4  ;;  %p813_p0 = scmp.ne.s32.totalorder %s1134_s3, %s812_s9  ;;  %s39_s28 = int_to_ptr.vmem [resolvable:$true] %s38_s28 }
   0x6   :  { %p816_p1 = scmp.lt.u32.totalorder %s812_s9, %s1134_s3 }
   0x8   :  { %p818_p2 = pnand %p816_p1, %p813_p0 }
   0xa   :  { %821 = shalt.err (!%p818_p2)
}
   0xb   :  { %s822_s14 = scalar_lea.vmem %s39_s28, 8192  ;;  %p827_p4 = scmp.lt.s32.totalorder %s39_s28, %s39_s28 }
   0xc   :  { %p823_p3 = scmp.ne.s32.totalorder %s39_s28, %s822_s14  ;;  %p828_p5 = scmp.lt.s32.totalorder %s822_s14, %s822_s14 }
   0xe   :  { %p829_p6 = por %p828_p5, %p827_p4 }
  0x10   :  { %p830_p7 = pnand %p829_p6, %p823_p3 }
  0x12   :  { %833 = shalt.err (!%p830_p7)
}
  0x13   :  { %s977_s15 = smov 512   ;;  %s978_s16 = smov 32  }
  0x14   :  { %44 = dma.hbm_to_vmem [thread:$0]  %s1134_s3, 8192, %s39_s28, [#allocation6], %s977_s15, %s977_s15, %s978_s16  }
  0x15   :  { %s979_s19 = smov [#allocation8]   ;;  %s980_s21 = smov [#allocation2]  }
  0x16   :  { %s63_s20 = sshll.u32 %s979_s19, 4  ;;  %s29_s22 = sshll.u32 %s980_s21, 4  ;;  %s64_s20 = int_to_ptr.vmem [resolvable:$true] %s63_s20  ;;  %s30_s22 = int_to_ptr.vmem [resolvable:$true] %s29_s22 }
  0x17   :  { %s834_s25 = scalar_lea.hbm %s1136_s5, 64 }
  0x18   :  { %p835_p8 = scmp.ne.s32.totalorder %s1136_s5, %s834_s25  ;;  %p838_p9 = scmp.lt.u32.totalorder %s834_s25, %s1136_s5 }
  0x1a   :  { %p840_p10 = pnand %p838_p9, %p835_p8 }
  0x1c   :  { %843 = shalt.err (!%p840_p10)
}
  0x1d   :  { %s844_s3 = scalar_lea.vmem %s64_s20, 64  ;;  %p849_p12 = scmp.lt.s32.totalorder %s64_s20, %s64_s20 }
  0x1e   :  { %p845_p11 = scmp.ne.s32.totalorder %s64_s20, %s844_s3  ;;  %p850_p13 = scmp.lt.s32.totalorder %s844_s3, %s844_s3 }
  0x20   :  { %p851_p0 = por %p850_p13, %p849_p12 }
  0x22   :  { %p852_p1 = pnand %p851_p0, %p845_p11 }
  0x24   :  { %855 = shalt.err (!%p852_p1)
}
  0x25   :  { %66 = dma.hbm_to_vmem [thread:$0]  %s1136_s5, 64, %s64_s20, [#allocation9]  }
  0x26   :  { %s856_s12 = scalar_lea.hbm %s1133_s2, 128 }
  0x27   :  { %p857_p2 = scmp.ne.s32.totalorder %s1133_s2, %s856_s12  ;;  %p860_p3 = scmp.lt.u32.totalorder %s856_s12, %s1133_s2 }
  0x29   :  { %p862_p4 = pnand %p860_p3, %p857_p2 }
  0x2b   :  { %865 = shalt.err (!%p862_p4)
}
  0x2c   :  { %s866_s19 = scalar_lea.vmem %s30_s22, 128  ;;  %p871_p6 = scmp.lt.s32.totalorder %s30_s22, %s30_s22 }
  0x2d   :  { %p867_p5 = scmp.ne.s32.totalorder %s30_s22, %s866_s19  ;;  %p872_p7 = scmp.lt.s32.totalorder %s866_s19, %s866_s19 }
  0x2f   :  { %p873_p8 = por %p872_p7, %p871_p6 }
  0x31   :  { %p874_p9 = pnand %p873_p8, %p867_p5 }
  0x33   :  { %877 = shalt.err (!%p874_p9)
}
  0x34   :  { %32 = dma.hbm_to_vmem [thread:$0]  %s1133_s2, 128, %s30_s22, [#allocation3]  }
  0x35   :  { %s981_s21 = smov [#allocation7]   ;;  %s982_s24 = smov [#allocation10]  }
  0x36   :  { %s50_s23 = sshll.u32 %s981_s21, 4  ;;  %s73_s25 = sshll.u32 %s982_s24, 4  ;;  %s51_s23 = int_to_ptr.vmem [resolvable:$true] %s50_s23  ;;  %s74_s25 = int_to_ptr.vmem [resolvable:$true] %s73_s25 }
  0x37   :  { %s878_s29 = scalar_lea.hbm %s1135_s4, 8192 }
  0x38   :  { %p879_p10 = scmp.ne.s32.totalorder %s1135_s4, %s878_s29  ;;  %p882_p11 = scmp.lt.u32.totalorder %s878_s29, %s1135_s4 }
  0x3a   :  { %p884_p12 = pnand %p882_p11, %p879_p10 }
  0x3c   :  { %887 = shalt.err (!%p884_p12)
}
  0x3d   :  { %s888_s2 = scalar_lea.vmem %s51_s23, 8192  ;;  %p893_p0 = scmp.lt.s32.totalorder %s51_s23, %s51_s23 }
  0x3e   :  { %p889_p13 = scmp.ne.s32.totalorder %s51_s23, %s888_s2  ;;  %p894_p1 = scmp.lt.s32.totalorder %s888_s2, %s888_s2 }
  0x40   :  { %p895_p2 = por %p894_p1, %p893_p0 }
  0x42   :  { %p896_p3 = pnand %p895_p2, %p889_p13 }
  0x44   :  { %899 = shalt.err (!%p896_p3)
}
  0x45   :  { %56 = dma.hbm_to_vmem [thread:$0]  %s1135_s4, 8192, %s51_s23, [#allocation6], %s977_s15, %s977_s15, %s978_s16  }
  0x46   :  { %s900_s13 = scalar_lea.hbm %s1137_s6, 64 }
  0x47   :  { %p901_p4 = scmp.ne.s32.totalorder %s1137_s6, %s900_s13  ;;  %p904_p5 = scmp.lt.u32.totalorder %s900_s13, %s1137_s6 }
  0x49   :  { %p906_p6 = pnand %p904_p5, %p901_p4 }
  0x4b   :  { %909 = shalt.err (!%p906_p6)
}
  0x4c   :  { %s910_s5 = scalar_lea.vmem %s74_s25, 64  ;;  %p915_p8 = scmp.lt.s32.totalorder %s74_s25, %s74_s25 }
  0x4d   :  { %p911_p7 = scmp.ne.s32.totalorder %s74_s25, %s910_s5  ;;  %p916_p9 = scmp.lt.s32.totalorder %s910_s5, %s910_s5 }
  0x4f   :  { %p917_p10 = por %p916_p9, %p915_p8 }
  0x51   :  { %p918_p11 = pnand %p917_p10, %p911_p7 }
  0x53   :  { %921 = shalt.err (!%p918_p11)
}
  0x54   :  { %76 = dma.hbm_to_vmem [thread:$0]  %s1137_s6, 64, %s74_s25, [#allocation9]  }
  0x55   :  { %966 = dma.done.wait [#allocation3], 128  }
  0x56   :  { %967 = vsyncadd [#allocation3], 4294967168 }
  0x57   :  { %968 = dma.done.wait [#allocation6], 16384  }
  0x58   :  { %969 = vsyncadd [#allocation6], 4294950912 }
  0x59   :  { %970 = dma.done.wait [#allocation9], 128  }
  0x5a   :  { %971 = vsyncadd [#allocation9], 4294967168  ;;  %v983_v0 = vmov 0.0   ;;  %v159_v1 = vld [vmem:[#allocation7 + $0x8] sm:$0xff]  ;;  %v161_v3 = vld [vmem:[#allocation7 + $0x18] sm:$0xff]  ;;  %s985_s23 = smov [#allocation11]  }
  0x5b   :  { %286 = vmatprep.mubr.f32.mxu0 %v983_v0  ;;  %357 = vmatprep.mubr.f32.mxu1 %v983_v0  ;;  %v163_v2 = vld [vmem:[#allocation7 + $0x28] sm:$0xff]  ;;  %v165_v5 = vld [vmem:[#allocation7 + $0x38] sm:$0xff]  ;;  %v158_v6 = vld [vmem:[#allocation7] sm:$0xff]  ;;  %s626_s24 = sshll.u32 %s985_s23, 4  ;;  %s627_s24 = int_to_ptr.vmem [resolvable:$true] %s626_s24 }
  0x5c   :  { %v654_v4 = vpack.c.bf16 %v163_v2, %v159_v1  ;;  %v162_v7 = vld [vmem:[#allocation7 + $0x20] sm:$0xff]  ;;  %v686_v8 = vpack.c.bf16 %v165_v5, %v161_v3  ;;  %v160_v10 = vld [vmem:[#allocation7 + $0x10] sm:$0xff]  ;;  %v167_v12 = vld [vmem:[#allocation7 + $0x48] sm:$0xff] }
  0x5d   :  { %v656_v9 = vpack.c.bf16 %v162_v7, %v158_v6  ;;  %v164_v11 = vld [vmem:[#allocation7 + $0x30] sm:$0xff]  ;;  %v171_v14 = vld [vmem:[#allocation7 + $0x68] sm:$0xff]  ;;  %v169_v15 = vld [vmem:[#allocation7 + $0x58] sm:$0xff] }
  0x5e   :  { %655 = vmatprep.subr.bf16.mxu0 %v654_v4  ;;  %v688_v13 = vpack.c.bf16 %v164_v11, %v160_v10  ;;  %v173_v16 = vld [vmem:[#allocation7 + $0x78] sm:$0xff]  ;;  %687 = vmatprep.subr.bf16.mxu1 %v686_v8  ;;  %v658_v17 = vpack.c.bf16 %v171_v14, %v167_v12  ;;  %v166_v19 = vld [vmem:[#allocation7 + $0x40] sm:$0xff]  ;;  %v168_v21 = vld [vmem:[#allocation7 + $0x50] sm:$0xff] }
  0x5f   :  { %657 = vmatpush1.bf16.msra.mxu0 %v656_v9  ;;  %v690_v18 = vpack.c.bf16 %v173_v16, %v169_v15  ;;  %v170_v20 = vld [vmem:[#allocation7 + $0x60] sm:$0xff]  ;;  %v172_v23 = vld [vmem:[#allocation7 + $0x70] sm:$0xff]  ;;  %v175_v24 = vld [vmem:[#allocation7 + $0x88] sm:$0xff] }
  0x60   :  { %689 = vmatpush1.bf16.msra.mxu1 %v688_v13  ;;  %v660_v22 = vpack.c.bf16 %v170_v20, %v166_v19  ;;  %v179_v25 = vld [vmem:[#allocation7 + $0xa8] sm:$0xff]  ;;  %659 = vmatprep.subr.bf16.mxu0 %v658_v17  ;;  %v692_v26 = vpack.c.bf16 %v172_v23, %v168_v21  ;;  %v177_v28 = vld [vmem:[#allocation7 + $0x98] sm:$0xff]  ;;  %v174_v30 = vld [vmem:[#allocation7 + $0x80] sm:$0xff] }
  0x61   :  { %691 = vmatprep.subr.bf16.mxu1 %v690_v18  ;;  %v662_v27 = vpack.c.bf16 %v179_v25, %v175_v24  ;;  %v181_v29 = vld [vmem:[#allocation7 + $0xb8] sm:$0xff]  ;;  %v178_v32 = vld [vmem:[#allocation7 + $0xa0] sm:$0xff]  ;;  %v176_v33 = vld [vmem:[#allocation7 + $0x90] sm:$0xff] }
  0x62   :  { %v694_v31 = vpack.c.bf16 %v181_v29, %v177_v28  ;;  %v180_v34 = vld [vmem:[#allocation7 + $0xb0] sm:$0xff]  ;;  %v664_v35 = vpack.c.bf16 %v178_v32, %v174_v30  ;;  %v183_v36 = vld [vmem:[#allocation7 + $0xc8] sm:$0xff]  ;;  %v185_v38 = vld [vmem:[#allocation7 + $0xd8] sm:$0xff] }
  0x63   :  { %661 = vmatpush1.bf16.msra.mxu0 %v660_v22  ;;  %v187_v37 = vld [vmem:[#allocation7 + $0xe8] sm:$0xff]  ;;  %v696_v39 = vpack.c.bf16 %v180_v34, %v176_v33  ;;  %v189_v41 = vld [vmem:[#allocation7 + $0xf8] sm:$0xff]  ;;  %v182_v42 = vld [vmem:[#allocation7 + $0xc0] sm:$0xff] }
  0x64   :  { %693 = vmatpush1.bf16.msra.mxu1 %v692_v26  ;;  %663 = vmatprep.subr.bf16.mxu0 %v662_v27  ;;  %v666_v40 = vpack.c.bf16 %v187_v37, %v183_v36  ;;  %v186_v43 = vld [vmem:[#allocation7 + $0xe0] sm:$0xff]  ;;  %v698_v44 = vpack.c.bf16 %v189_v41, %v185_v38  ;;  %v184_v45 = vld [vmem:[#allocation7 + $0xd0] sm:$0xff]  ;;  %v191_v47 = vld [vmem:[#allocation7 + $0x108] sm:$0xff] }
  0x65   :  { %695 = vmatprep.subr.bf16.mxu1 %v694_v31  ;;  %v188_v46 = vld [vmem:[#allocation7 + $0xf0] sm:$0xff]  ;;  %v195_v48 = vld [vmem:[#allocation7 + $0x128] sm:$0xff]  ;;  %v193_v49 = vld [vmem:[#allocation7 + $0x118] sm:$0xff]  ;;  %v668_v51 = vpack.c.bf16 %v186_v43, %v182_v42 }
  0x66   :  { %v197_v50 = vld [vmem:[#allocation7 + $0x138] sm:$0xff]  ;;  %v700_v52 = vpack.c.bf16 %v188_v46, %v184_v45  ;;  %v670_v53 = vpack.c.bf16 %v195_v48, %v191_v47  ;;  %v190_v54 = vld [vmem:[#allocation7 + $0x100] sm:$0xff]  ;;  %v192_v56 = vld [vmem:[#allocation7 + $0x110] sm:$0xff] }
  0x67   :  { %665 = vmatpush1.bf16.msra.mxu0 %v664_v35  ;;  %v194_v55 = vld [vmem:[#allocation7 + $0x120] sm:$0xff]  ;;  %v702_v57 = vpack.c.bf16 %v197_v50, %v193_v49  ;;  %v196_v58 = vld [vmem:[#allocation7 + $0x130] sm:$0xff]  ;;  %v199_v59 = vld [vmem:[#allocation7 + $0x148] sm:$0xff] }
  0x68   :  { %697 = vmatpush1.bf16.msra.mxu1 %v696_v39  ;;  %667 = vmatprep.subr.bf16.mxu0 %v666_v40  ;;  %v203_v60 = vld [vmem:[#allocation7 + $0x168] sm:$0xff]  ;;  %v201_v61 = vld [vmem:[#allocation7 + $0x158] sm:$0xff]  ;;  %v672_v63 = vpack.c.bf16 %v194_v55, %v190_v54  ;;  %v704_v1 = vpack.c.bf16 %v196_v58, %v192_v56  ;;  %v198_v3 = vld [vmem:[#allocation7 + $0x140] sm:$0xff] }
  0x69   :  { %699 = vmatprep.subr.bf16.mxu1 %v698_v44  ;;  %v205_v62 = vld [vmem:[#allocation7 + $0x178] sm:$0xff]  ;;  %v674_v2 = vpack.c.bf16 %v203_v60, %v199_v59  ;;  %v202_v4 = vld [vmem:[#allocation7 + $0x160] sm:$0xff]  ;;  %v200_v5 = vld [vmem:[#allocation7 + $0x150] sm:$0xff] }
  0x6a   :  { %v706_v6 = vpack.c.bf16 %v205_v62, %v201_v61  ;;  %v204_v7 = vld [vmem:[#allocation7 + $0x170] sm:$0xff]  ;;  %v207_v8 = vld [vmem:[#allocation7 + $0x188] sm:$0xff]  ;;  %v209_v10 = vld [vmem:[#allocation7 + $0x198] sm:$0xff]  ;;  %v676_v12 = vpack.c.bf16 %v202_v4, %v198_v3 }
  0x6b   :  { %669 = vmatpush1.bf16.msra.mxu0 %v668_v51  ;;  %v211_v9 = vld [vmem:[#allocation7 + $0x1a8] sm:$0xff]  ;;  %v213_v11 = vld [vmem:[#allocation7 + $0x1b8] sm:$0xff]  ;;  %v708_v13 = vpack.c.bf16 %v204_v7, %v200_v5  ;;  %v206_v15 = vld [vmem:[#allocation7 + $0x180] sm:$0xff] }
  0x6c   :  { %701 = vmatpush1.bf16.msra.mxu1 %v700_v52  ;;  %671 = vmatprep.subr.bf16.mxu0 %v670_v53  ;;  %v678_v14 = vpack.c.bf16 %v211_v9, %v207_v8  ;;  %v210_v16 = vld [vmem:[#allocation7 + $0x1a0] sm:$0xff]  ;;  %v208_v17 = vld [vmem:[#allocation7 + $0x190] sm:$0xff]  ;;  %v710_v18 = vpack.c.bf16 %v213_v11, %v209_v10  ;;  %v215_v20 = vld [vmem:[#allocation7 + $0x1c8] sm:$0xff] }
  0x6d   :  { %703 = vmatprep.subr.bf16.mxu1 %v702_v57  ;;  %v212_v19 = vld [vmem:[#allocation7 + $0x1b0] sm:$0xff]  ;;  %v219_v21 = vld [vmem:[#allocation7 + $0x1e8] sm:$0xff]  ;;  %v217_v22 = vld [vmem:[#allocation7 + $0x1d8] sm:$0xff]  ;;  %v680_v24 = vpack.c.bf16 %v210_v16, %v206_v15 }
  0x6e   :  { %v221_v23 = vld [vmem:[#allocation7 + $0x1f8] sm:$0xff]  ;;  %v712_v25 = vpack.c.bf16 %v212_v19, %v208_v17  ;;  %v682_v26 = vpack.c.bf16 %v219_v21, %v215_v20  ;;  %v214_v27 = vld [vmem:[#allocation7 + $0x1c0] sm:$0xff]  ;;  %v216_v29 = vld [vmem:[#allocation7 + $0x1d0] sm:$0xff] }
  0x6f   :  { %673 = vmatpush1.bf16.msra.mxu0 %v672_v63  ;;  %v218_v28 = vld [vmem:[#allocation7 + $0x1e0] sm:$0xff]  ;;  %v714_v30 = vpack.c.bf16 %v221_v23, %v217_v22  ;;  %v220_v31 = vld [vmem:[#allocation7 + $0x1f0] sm:$0xff]  ;;  %v94_v32 = vld [vmem:[#allocation5 + $0x8] sm:$0xff] }
  0x70   :  { %705 = vmatpush1.bf16.msra.mxu1 %v704_v1  ;;  %675 = vmatprep.subr.bf16.mxu0 %v674_v2  ;;  %v98_v33 = vld [vmem:[#allocation5 + $0x28] sm:$0xff]  ;;  %v96_v34 = vld [vmem:[#allocation5 + $0x18] sm:$0xff]  ;;  %v684_v36 = vpack.c.bf16 %v218_v28, %v214_v27  ;;  %v716_v37 = vpack.c.bf16 %v220_v31, %v216_v29  ;;  %v93_v39 = vld [vmem:[#allocation5] sm:$0xff] }
  0x71   :  { %707 = vmatprep.subr.bf16.mxu1 %v706_v6  ;;  %v100_v35 = vld [vmem:[#allocation5 + $0x38] sm:$0xff]  ;;  %v718_v38 = vpack.c.bf16 %v98_v33, %v94_v32  ;;  %v97_v40 = vld [vmem:[#allocation5 + $0x20] sm:$0xff]  ;;  %v95_v41 = vld [vmem:[#allocation5 + $0x10] sm:$0xff] }
  0x72   :  { %v750_v42 = vpack.c.bf16 %v100_v35, %v96_v34  ;;  %v99_v43 = vld [vmem:[#allocation5 + $0x30] sm:$0xff]  ;;  %v102_v44 = vld [vmem:[#allocation5 + $0x48] sm:$0xff]  ;;  %v104_v46 = vld [vmem:[#allocation5 + $0x58] sm:$0xff]  ;;  %v720_v49 = vpack.c.bf16 %v97_v40, %v93_v39 }
  0x73   :  { %677 = vmatpush1.bf16.msra.mxu0 %v676_v12  ;;  %v106_v45 = vld [vmem:[#allocation5 + $0x68] sm:$0xff]  ;;  %v108_v47 = vld [vmem:[#allocation5 + $0x78] sm:$0xff]  ;;  %v752_v50 = vpack.c.bf16 %v99_v43, %v95_v41  ;;  %v101_v52 = vld [vmem:[#allocation5 + $0x40] sm:$0xff] }
  0x74   :  { %709 = vmatpush1.bf16.msra.mxu1 %v708_v13  ;;  %679 = vmatprep.subr.bf16.mxu0 %v678_v14  ;;  %v157_v48 = vld [vmem:[%s1132_s1] sm:$0xff]  ;;  %v722_v51 = vpack.c.bf16 %v106_v45, %v102_v44  ;;  %v105_v53 = vld [vmem:[#allocation5 + $0x60] sm:$0xff]  ;;  %v103_v54 = vld [vmem:[#allocation5 + $0x50] sm:$0xff]  ;;  %v754_v55 = vpack.c.bf16 %v108_v47, %v104_v46 }
  0x75   :  { %711 = vmatprep.subr.bf16.mxu1 %v710_v18  ;;  %v107_v56 = vld [vmem:[#allocation5 + $0x70] sm:$0xff]  ;;  %v110_v57 = vld [vmem:[#allocation5 + $0x88] sm:$0xff]  ;;  %v112_v59 = vld [vmem:[#allocation5 + $0x98] sm:$0xff]  ;;  %v724_v61 = vpack.c.bf16 %v105_v53, %v101_v52 }
  0x76   :  { %v114_v58 = vld [vmem:[#allocation5 + $0xa8] sm:$0xff]  ;;  %v116_v60 = vld [vmem:[#allocation5 + $0xb8] sm:$0xff]  ;;  %v756_v62 = vpack.c.bf16 %v107_v56, %v103_v54  ;;  %v109_v1 = vld [vmem:[#allocation5 + $0x80] sm:$0xff] }
  0x77   :  { %681 = vmatpush1.bf16.msra.mxu0 %v680_v24  ;;  %v726_v63 = vpack.c.bf16 %v114_v58, %v110_v57  ;;  %v113_v2 = vld [vmem:[#allocation5 + $0xa0] sm:$0xff]  ;;  %v111_v3 = vld [vmem:[#allocation5 + $0x90] sm:$0xff]  ;;  %v758_v4 = vpack.c.bf16 %v116_v60, %v112_v59  ;;  %v118_v6 = vld [vmem:[#allocation5 + $0xc8] sm:$0xff] }
  0x78   :  { %713 = vmatpush1.bf16.msra.mxu1 %v712_v25  ;;  %683 = vmatprep.subr.bf16.mxu0 %v682_v26  ;;  %v115_v5 = vld [vmem:[#allocation5 + $0xb0] sm:$0xff]  ;;  %v122_v7 = vld [vmem:[#allocation5 + $0xe8] sm:$0xff]  ;;  %v120_v8 = vld [vmem:[#allocation5 + $0xd8] sm:$0xff]  ;;  %v728_v10 = vpack.c.bf16 %v113_v2, %v109_v1 }
  0x79   :  { %715 = vmatprep.subr.bf16.mxu1 %v714_v30  ;;  %v124_v9 = vld [vmem:[#allocation5 + $0xf8] sm:$0xff]  ;;  %v760_v11 = vpack.c.bf16 %v115_v5, %v111_v3  ;;  %v730_v12 = vpack.c.bf16 %v122_v7, %v118_v6  ;;  %v117_v13 = vld [vmem:[#allocation5 + $0xc0] sm:$0xff]  ;;  %v119_v15 = vld [vmem:[#allocation5 + $0xd0] sm:$0xff] }
  0x7a   :  { %v121_v14 = vld [vmem:[#allocation5 + $0xe0] sm:$0xff]  ;;  %v762_v16 = vpack.c.bf16 %v124_v9, %v120_v8  ;;  %v123_v17 = vld [vmem:[#allocation5 + $0xf0] sm:$0xff]  ;;  %v126_v18 = vld [vmem:[#allocation5 + $0x108] sm:$0xff] }
  0x7b   :  { %685 = vmatpush1.bf16.msra.mxu0 %v684_v36  ;;  %v130_v19 = vld [vmem:[#allocation5 + $0x128] sm:$0xff]  ;;  %v128_v20 = vld [vmem:[#allocation5 + $0x118] sm:$0xff]  ;;  %v732_v22 = vpack.c.bf16 %v121_v14, %v117_v13  ;;  %v125_v24 = vld [vmem:[#allocation5 + $0x100] sm:$0xff] }
  0x7c   :  { %717 = vmatpush1.bf16.msra.mxu1 %v716_v37  ;;  %719 = vmatprep.subr.bf16.mxu0 %v718_v38  ;;  %v132_v21 = vld [vmem:[#allocation5 + $0x138] sm:$0xff]  ;;  %v734_v23 = vpack.c.bf16 %v130_v19, %v126_v18  ;;  %v129_v25 = vld [vmem:[#allocation5 + $0x120] sm:$0xff]  ;;  %v127_v26 = vld [vmem:[#allocation5 + $0x110] sm:$0xff] }
  0x7d   :  { %751 = vmatprep.subr.bf16.mxu1 %v750_v42  ;;  %v766_v27 = vpack.c.bf16 %v132_v21, %v128_v20  ;;  %v131_v28 = vld [vmem:[#allocation5 + $0x130] sm:$0xff]  ;;  %v134_v29 = vld [vmem:[#allocation5 + $0x148] sm:$0xff]  ;;  %v136_v31 = vld [vmem:[#allocation5 + $0x158] sm:$0xff]  ;;  %v736_v33 = vpack.c.bf16 %v129_v25, %v125_v24 }
  0x7e   :  { %287 = vmatmul.mubr.f32.vlgmr.msra.gmra.mrb[0].mxu0 %v157_v48  ;;  %v138_v30 = vld [vmem:[#allocation5 + $0x168] sm:$0xff]  ;;  %v140_v32 = vld [vmem:[#allocation5 + $0x178] sm:$0xff]  ;;  %v768_v34 = vpack.c.bf16 %v131_v28, %v127_v26  ;;  %v133_v36 = vld [vmem:[#allocation5 + $0x140] sm:$0xff] }
  0x7f   :  { %358 = vmatmul.mubr.f32.vlgmr.msra.gmra.mrb[0].mxu1 %v157_v48  ;;  %721 = vmatpush1.bf16.msra.mxu0 %v720_v49  ;;  %v738_v35 = vpack.c.bf16 %v138_v30, %v134_v29  ;;  %v137_v37 = vld [vmem:[#allocation5 + $0x160] sm:$0xff]  ;;  %v135_v38 = vld [vmem:[#allocation5 + $0x150] sm:$0xff]  ;;  %v770_v39 = vpack.c.bf16 %v140_v32, %v136_v31  ;;  %v142_v41 = vld [vmem:[#allocation5 + $0x188] sm:$0xff] }
  0x80   :  { %753 = vmatpush1.bf16.msra.mxu1 %v752_v50  ;;  %723 = vmatprep.subr.bf16.mxu0 %v722_v51  ;;  %v139_v40 = vld [vmem:[#allocation5 + $0x170] sm:$0xff]  ;;  %v146_v42 = vld [vmem:[#allocation5 + $0x1a8] sm:$0xff]  ;;  %v144_v43 = vld [vmem:[#allocation5 + $0x198] sm:$0xff]  ;;  %v740_v45 = vpack.c.bf16 %v137_v37, %v133_v36 }
  0x81   :  { %755 = vmatprep.subr.bf16.mxu1 %v754_v55  ;;  %428 = vmatprep.mubr.f32.mxu0 %v983_v0  ;;  %v148_v44 = vld [vmem:[#allocation5 + $0x1b8] sm:$0xff]  ;;  %v772_v46 = vpack.c.bf16 %v139_v40, %v135_v38  ;;  %v742_v47 = vpack.c.bf16 %v146_v42, %v142_v41  ;;  %v141_v48 = vld [vmem:[#allocation5 + $0x180] sm:$0xff]  ;;  %v143_v50 = vld [vmem:[#allocation5 + $0x190] sm:$0xff] }
  0x82   :  { %499 = vmatprep.mubr.f32.mxu1 %v983_v0  ;;  %v764_v0 = vpack.c.bf16 %v123_v17, %v119_v15  ;;  %v145_v49 = vld [vmem:[#allocation5 + $0x1a0] sm:$0xff]  ;;  %v774_v51 = vpack.c.bf16 %v148_v44, %v144_v43  ;;  %v147_v52 = vld [vmem:[#allocation5 + $0x1b0] sm:$0xff]  ;;  %v150_v53 = vld [vmem:[#allocation5 + $0x1c8] sm:$0xff] }
  0x83   :  { %725 = vmatpush1.bf16.msra.mxu0 %v724_v61  ;;  %v154_v54 = vld [vmem:[#allocation5 + $0x1e8] sm:$0xff]  ;;  %v152_v55 = vld [vmem:[#allocation5 + $0x1d8] sm:$0xff]  ;;  %v744_v57 = vpack.c.bf16 %v145_v49, %v141_v48  ;;  %v776_v58 = vpack.c.bf16 %v147_v52, %v143_v50  ;;  %v149_v60 = vld [vmem:[#allocation5 + $0x1c0] sm:$0xff] }
  0x84   :  { %757 = vmatpush1.bf16.msra.mxu1 %v756_v62  ;;  %727 = vmatprep.subr.bf16.mxu0 %v726_v63  ;;  %v156_v56 = vld [vmem:[#allocation5 + $0x1f8] sm:$0xff]  ;;  %v746_v59 = vpack.c.bf16 %v154_v54, %v150_v53  ;;  %v153_v61 = vld [vmem:[#allocation5 + $0x1e0] sm:$0xff]  ;;  %v151_v63 = vld [vmem:[#allocation5 + $0x1d0] sm:$0xff] }
  0x85   :  { %759 = vmatprep.subr.bf16.mxu1 %v758_v4  ;;  %v778_v62 = vpack.c.bf16 %v156_v56, %v152_v55  ;;  %v155_v1 = vld [vmem:[#allocation5 + $0x1f0] sm:$0xff]  ;;  %v748_v2 = vpack.c.bf16 %v153_v61, %v149_v60  ;;  %v92_v4 = vld [vmem:[%s1131_s0] sm:$0xff]  ;;  %v507_v31 = vld [vmem:[#allocation8] sm:$0xf]  ;;  %s984_s0 = smov [#allocation12]  }
  0x86   :  { %v780_v3 = vpack.c.bf16 %v155_v1, %v151_v63  ;;  %v508_v36 = vld [vmem:[#allocation10] sm:$0xf]  ;;  %s636_s21 = sshll.u32 %s984_s0, 4  ;;  %s637_s21 = int_to_ptr.vmem [resolvable:$true] %s636_s21 }
  0x87   :  { %729 = vmatpush1.bf16.msra.mxu0 %v728_v10  ;;  %s922_s25 = scalar_lea.vmem %s637_s21, 128  ;;  %p927_p13 = scmp.lt.s32.totalorder %s637_s21, %s637_s21 }
  0x88   :  { %761 = vmatpush1.bf16.msra.mxu1 %v760_v11  ;;  %731 = vmatprep.subr.bf16.mxu0 %v730_v12  ;;  %p923_p12 = scmp.ne.s32.totalorder %s637_s21, %s922_s25  ;;  %p928_p0 = scmp.lt.s32.totalorder %s922_s25, %s922_s25 }
  0x89   :  { %763 = vmatprep.subr.bf16.mxu1 %v762_v16 }
  0x8a   :  { %p929_p1 = por %p928_p0, %p927_p13 }
  0x8b   :  { %733 = vmatpush1.bf16.msra.mxu0 %v732_v22 }
  0x8c   :  { %765 = vmatpush1.bf16.msra.mxu1 %v764_v0  ;;  %735 = vmatprep.subr.bf16.mxu0 %v734_v23  ;;  %v530_v23 = vlaneseq  ;;  %p930_p2 = pnand %p929_p1, %p923_p12 }
  0x8d   :  { %767 = vmatprep.subr.bf16.mxu1 %v766_v27 }
  0x8e   :  { %v531_v26 = vshrl.u32 %v530_v23, 7 }
  0x8f   :  { %737 = vmatpush1.bf16.msra.mxu0 %v736_v33 }
  0x90   :  { %769 = vmatpush1.bf16.msra.mxu1 %v768_v34  ;;  %739 = vmatprep.subr.bf16.mxu0 %v738_v35  ;;  %v532_v27 = vsub.s32 0, %v531_v26  ;;  %v536_v28 = vsub.s32 1, %v531_v26  ;;  %v540_v29 = vsub.s32 2, %v531_v26  ;;  %v544_v30 = vsub.s32 3, %v531_v26 }
  0x91   :  { %771 = vmatprep.subr.bf16.mxu1 %v770_v39 }
  0x92   :  { %v533_v32 = vrot.slane %v507_v31, %v532_v27  ;;  %v537_v33 = vrot.slane %v507_v31, %v536_v28  ;;  %v541_v34 = vrot.slane %v507_v31, %v540_v29  ;;  %v545_v35 = vrot.slane %v507_v31, %v544_v30 }
  0x93   :  { %741 = vmatpush1.bf16.msra.mxu0 %v740_v45  ;;  %v566_v42 = vrot.slane %v508_v36, %v532_v27  ;;  %v570_v43 = vrot.slane %v508_v36, %v536_v28  ;;  %v574_v44 = vrot.slane %v508_v36, %v540_v29  ;;  %v578_v45 = vrot.slane %v508_v36, %v544_v30 }
  0x94   :  { %773 = vmatpush1.bf16.msra.mxu1 %v772_v46  ;;  %743 = vmatprep.subr.bf16.mxu0 %v742_v47 }
  0x95   :  { %775 = vmatprep.subr.bf16.mxu1 %v774_v51 }
  0x97   :  { %745 = vmatpush1.bf16.msra.mxu0 %v744_v57 }
  0x98   :  { %777 = vmatpush1.bf16.msra.mxu1 %v776_v58  ;;  %747 = vmatprep.subr.bf16.mxu0 %v746_v59 }
  0x99   :  { %779 = vmatprep.subr.bf16.mxu1 %v778_v62 }
  0x9b   :  { %749 = vmatpush1.bf16.msra.mxu0 %v748_v2 }
  0x9c   :  { %781 = vmatpush1.bf16.msra.mxu1 %v780_v3 }
  0x9e   :  { %429 = vmatmul.mubr.f32.vlgmr.msra.gmra.mrb[0].mxu0 %v92_v4 }
  0x9f   :  { %500 = vmatmul.mubr.f32.vlgmr.msra.gmra.mrb[0].mxu1 %v92_v4 }
 0x171   :  { %v430_v5 = vpop.f32.mrb[0].mxu0 }
 0x172   :  { %v514_v6 = vmul.f32 %v430_v5, %v430_v5  ;;  %v501_v7 = vpop.f32.mrb[0].mxu1  ;;  %v432_v8 = vpop.f32.mrb[1].mxu0 }
 0x173   :  { %v509_v9 = vadd.f32 %v432_v8, %v430_v5  ;;  %v515_v10 = vmul.f32 %v432_v8, %v432_v8  ;;  %v503_v11 = vpop.f32.mrb[1].mxu1  ;;  %v516_v12 = vmul.f32 %v501_v7, %v501_v7 }
 0x174   :  { %v517_v15 = vmul.f32 %v503_v11, %v503_v11 }
 0x175   :  { %v518_v13 = vadd.f32 %v515_v10, %v514_v6  ;;  %v510_v14 = vadd.f32 %v509_v9, %v501_v7 }
 0x177   :  { %v511_v16 = vadd.f32 %v510_v14, %v503_v11  ;;  %v519_v17 = vadd.f32 %v518_v13, %v516_v12 }
 0x179   :  { %512 = vadd.xlane.f32.xlu0 %v511_v16  ;;  %v520_v18 = vadd.f32 %v519_v17, %v517_v15 }
 0x17d   :  { %521 = vadd.xlane.f32.xlu0 %v520_v18 }
 0x206   :  { %v513_v19 = vpop.xlane.xlu0 %512 }
 0x207   :  { %v523_v20 = vmul.f32 0.0078125, %v513_v19 }
 0x209   :  { %v525_v22 = vmul.f32 %v523_v20, %v523_v20 }
 0x20a   :  { %v522_v21 = vpop.xlane.xlu0 %521 }
 0x20b   :  { %v524_v0 = vmul.f32 0.0078125, %v522_v21 }
 0x20d   :  { %v526_v24 = vsub.f32 %v524_v0, %v525_v22 }
 0x20f   :  { %v527_v25 = vadd.f32 1e-05, %v526_v24 }
 0x211   :  { %796 = vrsqrt.f32 %v527_v25 }
 0x21b   :  { %v797_v37 = vpop.eup %796 }
 0x21c   :  { %v550_v38 = vmul.f32 %v797_v37, %v533_v32  ;;  %v551_v39 = vmul.f32 %v797_v37, %v537_v33  ;;  %v552_v40 = vmul.f32 %v797_v37, %v541_v34  ;;  %v553_v41 = vmul.f32 %v797_v37, %v545_v35 }
 0x21e   :  { %v558_v46 = vmul.f32 %v550_v38, %v523_v20  ;;  %v559_v47 = vmul.f32 %v551_v39, %v523_v20  ;;  %v560_v48 = vmul.f32 %v552_v40, %v523_v20  ;;  %v561_v49 = vmul.f32 %v553_v41, %v523_v20 }
 0x21f   :  { %v554_v50 = vmul.f32 %v550_v38, %v430_v5  ;;  %v555_v51 = vmul.f32 %v551_v39, %v432_v8  ;;  %v556_v52 = vmul.f32 %v552_v40, %v501_v7  ;;  %v557_v57 = vmul.f32 %v553_v41, %v503_v11  ;;  %v506_v11 = vld [vmem:[#allocation2] sm:$0xff] }
 0x220   :  { %v583_v53 = vsub.f32 %v566_v42, %v558_v46  ;;  %v584_v54 = vsub.f32 %v570_v43, %v559_v47  ;;  %v585_v55 = vsub.f32 %v574_v44, %v560_v48  ;;  %v586_v56 = vsub.f32 %v578_v45, %v561_v49 }
 0x222   :  { %v587_v58 = vadd.f32 %v583_v53, %v554_v50  ;;  %v588_v59 = vadd.f32 %v584_v54, %v555_v51  ;;  %v589_v60 = vadd.f32 %v585_v55, %v556_v52  ;;  %v590_v61 = vadd.f32 %v586_v56, %v557_v57 }
 0x224   :  { %v651_v62 = vmul.f32 -1.442695, %v587_v58  ;;  %v652_v63 = vmul.f32 -1.442695, %v588_v59  ;;  %v653_v1 = vmul.f32 -1.442695, %v589_v60 }
 0x225   :  { %v610_v2 = vmul.f32 0.70710677, %v590_v61  ;;  %v609_v12 = vmul.f32 0.5, %v590_v61 }
 0x226   :  { %798 = vpow2.f32 %v651_v62 }
 0x227   :  { %800 = vpow2.f32 %v652_v63 }
 0x228   :  { %802 = vpow2.f32 %v653_v1 }
 0x229   :  { %804 = verf.f32 %v610_v2 }
 0x230   :  { %v799_v3 = vpop.eup %798 }
 0x231   :  { %v801_v4 = vpop.eup %800  ;;  %v594_v5 = vadd.f32 1.0, %v799_v3 }
 0x232   :  { %v803_v6 = vpop.eup %802  ;;  %v600_v7 = vadd.f32 1.0, %v801_v4 }
 0x233   :  { %806 = vrcp.f32 %v594_v5  ;;  %v606_v8 = vadd.f32 1.0, %v803_v6  ;;  %v805_v9 = vpop.eup %804 }
 0x234   :  { %808 = vrcp.f32 %v600_v7  ;;  %v612_v10 = vadd.f32 1.0, %v805_v9 }
 0x235   :  { %810 = vrcp.f32 %v606_v8 }
 0x236   :  { %v613_v14 = vmul.f32 %v612_v10, %v609_v12 }
 0x23d   :  { %v807_v13 = vpop.eup %806 }
 0x23e   :  { %v809_v15 = vpop.eup %808  ;;  %v614_v16 = vmul.f32 %v807_v13, %v506_v11 }
 0x23f   :  { %v615_v17 = vmul.f32 %v809_v15, %v613_v14  ;;  %v811_v19 = vpop.eup %810 }
 0x241   :  { %v616_v18 = vadd.f32 %v615_v17, %v614_v16 }
 0x243   :  { %v617_v20 = vmul.f32 %v811_v19, %v616_v18  ;;  %619 = vst [vmem:[#allocation12] sm:$0xff] %v616_v18 }
 0x244   :  { %933 = shalt.err (!%p930_p2)
}
 0x245   :  { %s934_s29 = scalar_lea.hbm %s1139_s8, 128 }
 0x246   :  { %p935_p3 = scmp.ne.s32.totalorder %s1139_s8, %s934_s29  ;;  %p938_p4 = scmp.lt.u32.totalorder %s934_s29, %s1139_s8 }
 0x248   :  { %p940_p5 = pnand %p938_p4, %p935_p3 }
 0x24a   :  { %943 = shalt.err (!%p940_p5)
}
 0x24b   :  { %639 = dma.vmem_to_hbm [thread:$0]  %s637_s21, 128, %s1139_s8, [#allocation13]   ;;  %618 = vst [vmem:[#allocation11] sm:$0xff] %v617_v20 }
 0x24c   :  { %s944_s10 = scalar_lea.vmem %s627_s24, 128  ;;  %p949_p7 = scmp.lt.s32.totalorder %s627_s24, %s627_s24 }
 0x24d   :  { %p945_p6 = scmp.ne.s32.totalorder %s627_s24, %s944_s10  ;;  %p950_p8 = scmp.lt.s32.totalorder %s944_s10, %s944_s10 }
 0x24f   :  { %p951_p9 = por %p950_p8, %p949_p7 }
 0x251   :  { %p952_p10 = pnand %p951_p9, %p945_p6 }
 0x253   :  { %955 = shalt.err (!%p952_p10)
}
 0x254   :  { %s956_s13 = scalar_lea.hbm %s1138_s7, 128 }
 0x255   :  { %p957_p11 = scmp.ne.s32.totalorder %s1138_s7, %s956_s13  ;;  %p960_p12 = scmp.lt.u32.totalorder %s956_s13, %s1138_s7 }
 0x257   :  { %p962_p13 = pnand %p960_p12, %p957_p11 }
 0x259   :  { %965 = shalt.err (!%p962_p13)
}
 0x25a   :  { %629 = dma.vmem_to_hbm [thread:$0]  %s627_s24, 128, %s1138_s7, [#allocation4]  }
 0x25b   :  { %972 = dma.done.wait [#allocation4], 128  }
 0x25c   :  { %973 = vsyncadd [#allocation4], 4294967168 }
 0x25d   :  { %974 = dma.done.wait [#allocation13], 128  }
 0x25e   :  { %975 = vsyncadd [#allocation13], 4294967168 }
 0x25f   :  { %646 = vsyncpa [#allocation3], 1 }
 0x260   :  { %647 = vsyncpa [#allocation6], 1 }
 0x261   :  { %648 = vsyncpa [#allocation9], 1 }
 0x262   :  { %649 = vsyncpa [#allocation4], 1 }
 0x263   :  { %650 = vsyncpa [#allocation13], 1 }

</bundles_post_ra>
